<compile_context>
chip_gen: v7x
topology: tpu7x:2x2x1
jax: 0.10.0
libtpu: 0.0.40
codegen_flags: <defaults>
</compile_context>

<pallas_src>
import functools
import math

import jax
import jax.numpy as jnp
from jax.experimental import pallas as pl
from jax.experimental.pallas import tpu as pltpu


def _mha_kernel(x_ref, wqkv_ref, wo_ref, bo_ref, o_ref, *, num_heads, scale):
    """One grid step: a block of batch rows, all heads at once.

    x_ref    : (Bb, T, E)    f32   activations (bf16 cast done in-kernel)
    wqkv_ref : (3*NH, H, E)  bf16  per-head-stacked Wq / Wk / Wv
    wo_ref   : (NH, H, E)    bf16  per-head row blocks of W_o
    bo_ref   : (1, E)        f32   W_o bias
    o_ref    : (Bb, T, E)    output
    """
    block_b, T, E = x_ref.shape
    NH = num_heads

    # Causal mask, shared across heads and across the batch rows of this step.
    # NOTE: deliberately NOT hoisted into an init-once scratch under
    # pl.when(step == 0): with a "parallel" (megacore) grid axis only one core
    # runs step 0 and the other core would read uninitialized scratch.  The
    # iota/compare is VPU filler underneath the MXU ops.
    row = jax.lax.broadcasted_iota(jnp.int32, (T, T), 0)
    col = jax.lax.broadcasted_iota(jnp.int32, (T, T), 1)
    causal = (row >= col)[None]                          # (1, T, T)

    for b in range(block_b):                             # tiny static batch loop
        x = x_ref[b].astype(jnp.bfloat16)                # (T, E)

        # All heads' Q, K, V in one batched MXU op (same FLOPs as a fused
        # (T,E)@(E,3E) matmul); the q/k/v splits below are free outer-dim
        # selections - no lane slicing, no relayouts.
        xb = jnp.broadcast_to(x, (3 * NH, T, E))
        qkv = jnp.einsum("gte,ghe->gth", xb, wqkv_ref[...],
                         preferred_element_type=jnp.float32)     # (3NH, T, H)

        q = (qkv[0:NH] * scale).astype(jnp.bfloat16)     # scale applied in f32
        k = qkv[NH:2 * NH].astype(jnp.bfloat16)
        v = qkv[2 * NH:3 * NH].astype(jnp.bfloat16)

        # Scores + softmax (f32 math), batched over heads.
        s = jnp.einsum("gqh,gkh->gqk", q, k,
                       preferred_element_type=jnp.float32)       # (NH, T, T)
        # Finite sentinel is safe: causal masking never masks the diagonal.
        s = jnp.where(causal, s, -1e30)
        s = s - jnp.max(s, axis=-1, keepdims=True)
        p = jnp.exp(s)
        inv = pl.reciprocal(jnp.sum(p, axis=-1, keepdims=True), approx=True)
        p = (p * inv).astype(jnp.bfloat16)

        o_h = jnp.einsum("gqk,gkh->gqh", p, v,
                         preferred_element_type=jnp.float32)     # (NH, T, H)

        # Head merge folded into the output projection:
        #   concat_h(o_h) @ W_o == sum_h  o_h[h] @ W_o[h*H:(h+1)*H, :]
        # -> one batched MXU op + an outer-dim add; no lane concatenate.
        o_p = jnp.einsum("gqh,ghe->gqe", o_h.astype(jnp.bfloat16), wo_ref[...],
                         preferred_element_type=jnp.float32)     # (NH, T, E)
        out = jnp.sum(o_p, axis=0) + bo_ref[...]                 # (T, E)

        # Dropout (eval mode) == identity.
        o_ref[b] = out.astype(o_ref.dtype)


def prepare_mha_params(w_q, w_k, w_v, w_o, b_o, *, num_heads):
    """One-time weight preprocessing (hoisted off the per-call hot path).

    w_q/w_k/w_v/w_o: (E_in, E_out) = PyTorch `weight.T`; w_q/w_k/w_v have
    per-head output columns h*H:(h+1)*H, w_o has per-head input rows.
    """
    E = w_q.shape[0]
    assert E % num_heads == 0
    H = E // num_heads

    def per_head(w):                                     # (E, E) -> (NH, H, E_in)
        return jnp.transpose(w.reshape(E, num_heads, H), (1, 2, 0))

    w_qkv_heads = jnp.concatenate(
        [per_head(w_q), per_head(w_k), per_head(w_v)], axis=0
    ).astype(jnp.bfloat16)                               # (3*NH, H, E)
    w_o_heads = w_o.reshape(num_heads, H, E).astype(jnp.bfloat16)   # (NH, H, E)
    b_o_row = b_o.reshape(1, E).astype(jnp.float32)                 # (1, E)
    return w_qkv_heads, w_o_heads, b_o_row


def mha_forward(x, params, *, num_heads, batch_block=None, out_dtype=jnp.float32):
    """x: (B, T, E) f32; params from prepare_mha_params -> (B, T, E) out_dtype.

    batch_block:
      * None / B -> single kernel invocation (best on 1-TensorCore v5e/v6e).
      * B // 2   -> 2-step "parallel" grid: shards batch across both v7x cores.
    """
    w_qkv_heads, w_o_heads, b_o_row = params
    B, T, E = x.shape
    H = E // num_heads
    assert E == num_heads * H
    if batch_block is None:
        batch_block = B
    assert B % batch_block == 0
    grid = (B // batch_block,)

    kernel = functools.partial(_mha_kernel, num_heads=num_heads,
                               scale=1.0 / math.sqrt(E))

    flops = (2 * B * T * E * 3 * E            # QKV projection
             + 2 * B * T * T * E              # q @ k^T over all heads
             + 2 * B * T * T * E              # p @ v   over all heads
             + 2 * B * T * E * E)             # output projection
    transcendentals = B * num_heads * T * T   # exp in softmax
    bytes_accessed = (x.size * x.dtype.itemsize
                      + w_qkv_heads.size * 2 + w_o_heads.size * 2
                      + b_o_row.size * 4
                      + B * T * E * jnp.dtype(out_dtype).itemsize)

    return pl.pallas_call(
        kernel,
        out_shape=jax.ShapeDtypeStruct((B, T, E), out_dtype),
        grid_spec=pltpu.PrefetchScalarGridSpec(
            num_scalar_prefetch=0,
            grid=grid,
            in_specs=[
                pl.BlockSpec((batch_block, T, E), lambda i: (i, 0, 0)),    # x
                # Grid-invariant weights (see TODO in header about capping
                # their buffering at production E).
                pl.BlockSpec((3 * num_heads, H, E), lambda i: (0, 0, 0)),  # Wqkv
                pl.BlockSpec((num_heads, H, E), lambda i: (0, 0, 0)),      # Wo
                pl.BlockSpec((1, E), lambda i: (0, 0)),                    # bias
            ],
            out_specs=pl.BlockSpec((batch_block, T, E), lambda i: (i, 0, 0)),
        ),
        compiler_params=pltpu.CompilerParams(
            dimension_semantics=("parallel",),
        ),
        cost_estimate=pl.CostEstimate(
            flops=flops,
            transcendentals=transcendentals,
            bytes_accessed=bytes_accessed,
        ),
    )(x, w_qkv_heads, w_o_heads, b_o_row)


if __name__ == "__main__":
    # Small config consistent with the module.  io_size=128 keeps every kernel
    # load/store lane-dense (last dim == 128 lanes); 4 heads of size 32.
    B, T, E, NH = 2, 8, 128, 4
    H = E // NH

    key = jax.random.PRNGKey(0)
    k_x, k_q, k_k, k_v, k_o, k_b = jax.random.split(key, 6)

    init = 1.0 / math.sqrt(E)
    x = jax.random.normal(k_x, (B, T, E), dtype=jnp.float32)
    # Linear(no bias) weights stored as (in, out) = PyTorch weight.T; per-head
    # output columns are the blocks h*H:(h+1)*H.
    w_q = jax.random.normal(k_q, (E, E), dtype=jnp.float32) * init
    w_k = jax.random.normal(k_k, (E, E), dtype=jnp.float32) * init
    w_v = jax.random.normal(k_v, (E, E), dtype=jnp.float32) * init
    w_o = jax.random.normal(k_o, (E, E), dtype=jnp.float32) * init
    b_o = jax.random.normal(k_b, (E,), dtype=jnp.float32) * 0.1

    # One-time weight prep (off the hot path).
    params = prepare_mha_params(w_q, w_k, w_v, w_o, b_o, num_heads=NH)

    # Pure-JAX f32 reference (eval-mode dropout == identity, nanogpt scaling:
    # scores divided by sqrt(C) with C = io_size).
    scale = 1.0 / math.sqrt(E)
    mask = jnp.tril(jnp.ones((T, T), dtype=bool))
    heads = []
    for h in range(NH):
        q_ = x @ w_q[:, h * H:(h + 1) * H]
        k_ = x @ w_k[:, h * H:(h + 1) * H]
        v_ = x @ w_v[:, h * H:(h + 1) * H]
        att = (q_ @ jnp.swapaxes(k_, -2, -1)) * scale
        att = jnp.where(mask[None], att, -jnp.inf)
        att = jax.nn.softmax(att, axis=-1)
        heads.append(att @ v_)
    ref = jnp.concatenate(heads, axis=-1) @ w_o + b_o

    # Default path: single invocation with the whole batch resident (v5e/v6e).
    out = jax.block_until_ready(mha_forward(x, params, num_heads=NH))
    assert out.shape == (B, T, E)
    err = float(jnp.max(jnp.abs(out - ref)))
    assert jnp.allclose(out, ref, atol=1e-1, rtol=5e-2), err

    # v7x-friendly path: 2-step "parallel" grid (one batch row per TensorCore).
    out2 = jax.block_until_ready(
        mha_forward(x, params, num_heads=NH, batch_block=1))
    err2 = float(jnp.max(jnp.abs(out2 - ref)))
    assert jnp.allclose(out2, ref, atol=1e-1, rtol=5e-2), err2

    print("KERNEL_OK")
</pallas_src>

<mosaic_0001>
module attributes {stable_mosaic.version = 11 : i64} {
  func.func @_mha_kernel(%arg0: i32, %arg1: memref<2x8x128xf32, #tpu.memory_space<vmem>>, %arg2: memref<12x32x128xbf16, #tpu.memory_space<vmem>>, %arg3: memref<4x32x128xbf16, #tpu.memory_space<vmem>>, %arg4: memref<1x128xf32, #tpu.memory_space<vmem>>, %arg5: memref<2x8x128xf32, #tpu.memory_space<vmem>>) attributes {dimension_semantics = [#tpu.dimension_semantics<parallel>], iteration_bounds = array<i64: 1>, scalar_prefetch = 0 : i64, scratch_operands = 0 : i64, tpu.core_type = #tpu.core_type<tc>, window_params = [{transform_indices = @transform_0, window_bounds = array<i64: 2, 8, 128>}, {pipeline_mode = #tpu.pipeline_mode<synchronous>, transform_indices = @transform_1, window_bounds = array<i64: 12, 32, 128>}, {pipeline_mode = #tpu.pipeline_mode<synchronous>, transform_indices = @transform_2, window_bounds = array<i64: 4, 32, 128>}, {pipeline_mode = #tpu.pipeline_mode<synchronous>, transform_indices = @transform_3, window_bounds = array<i64: 1, 128>}, {transform_indices = @transform_4, window_bounds = array<i64: 2, 8, 128>}]} {
    %0 = tpu.iota {dimensions = array<i32: 0>} : vector<8x8xi32>
    %1 = tpu.iota {dimensions = array<i32: 1>} : vector<8x8xi32>
    %2 = arith.cmpi sge, %0, %1 : vector<8x8xi32>
    %3 = vector.shape_cast %2 : vector<8x8xi1> to vector<1x8x8xi1>
    %c0 = arith.constant 0 : index
    %c0_0 = arith.constant 0 : index
    %c0_1 = arith.constant 0 : index
    %4 = vector.load %arg1[%c0, %c0_0, %c0_1] : memref<2x8x128xf32, #tpu.memory_space<vmem>>, vector<1x8x128xf32>
    %5 = vector.shape_cast %4 : vector<1x8x128xf32> to vector<8x128xf32>
    %6 = arith.truncf %5 : vector<8x128xf32> to vector<8x128xbf16>
    %7 = vector.shape_cast %6 : vector<8x128xbf16> to vector<1x8x128xbf16>
    %8 = vector.broadcast %7 : vector<1x8x128xbf16> to vector<12x8x128xbf16>
    %c0_2 = arith.constant 0 : index
    %c0_3 = arith.constant 0 : index
    %c0_4 = arith.constant 0 : index
    %9 = vector.load %arg2[%c0_2, %c0_3, %c0_4] : memref<12x32x128xbf16, #tpu.memory_space<vmem>>, vector<12x32x128xbf16>
    "tpu.trace_start"() <{level = 10 : i32, message = "gte,ghe->gth"}> : () -> ()
    %cst = arith.constant dense<0.000000e+00> : vector<12x8x32xf32>
    %10 = tpu.matmul %8, %9, %cst {dimension_numbers = #tpu.dot_dimension_numbers<[2], [2], [1], [1], [0, 0, 0, 1, 1, 1], [0], [0]>} : vector<12x8x128xbf16>, vector<12x32x128xbf16>, vector<12x8x32xf32> -> vector<12x8x32xf32>
    "tpu.trace_stop"() : () -> ()
    %11 = vector.extract_strided_slice %10 {offsets = [0, 0, 0], sizes = [4, 8, 32], strides = [1, 1, 1]} : vector<12x8x32xf32> to vector<4x8x32xf32>
    %cst_5 = arith.constant 0.0883883461 : f32
    %12 = vector.broadcast %cst_5 : f32 to vector<4x8x32xf32>
    %13 = arith.mulf %11, %12 : vector<4x8x32xf32>
    %14 = arith.truncf %13 : vector<4x8x32xf32> to vector<4x8x32xbf16>
    %15 = vector.extract_strided_slice %10 {offsets = [4, 0, 0], sizes = [4, 8, 32], strides = [1, 1, 1]} : vector<12x8x32xf32> to vector<4x8x32xf32>
    %16 = arith.truncf %15 : vector<4x8x32xf32> to vector<4x8x32xbf16>
    %17 = vector.extract_strided_slice %10 {offsets = [8, 0, 0], sizes = [4, 8, 32], strides = [1, 1, 1]} : vector<12x8x32xf32> to vector<4x8x32xf32>
    %18 = arith.truncf %17 : vector<4x8x32xf32> to vector<4x8x32xbf16>
    "tpu.trace_start"() <{level = 10 : i32, message = "gqh,gkh->gqk"}> : () -> ()
    %cst_6 = arith.constant dense<0.000000e+00> : vector<4x8x8xf32>
    %19 = tpu.matmul %14, %16, %cst_6 {dimension_numbers = #tpu.dot_dimension_numbers<[2], [2], [1], [1], [0, 0, 0, 1, 1, 1], [0], [0]>} : vector<4x8x32xbf16>, vector<4x8x32xbf16>, vector<4x8x8xf32> -> vector<4x8x8xf32>
    %cst_7 = arith.constant -1.000000e+30 : f32
    "tpu.trace_stop"() : () -> ()
    %20 = vector.shape_cast %3 : vector<1x8x8xi1> to vector<1x8x8xi1>
    %21 = vector.broadcast %20 : vector<1x8x8xi1> to vector<4x8x8xi1>
    %22 = vector.broadcast %cst_7 : f32 to vector<4x8x8xf32>
    %23 = arith.select %21, %19, %22 : vector<4x8x8xi1>, vector<4x8x8xf32>
    %cst_8 = arith.constant dense<0xFF800000> : vector<4x8xf32>
    %24 = vector.multi_reduction <maximumf>, %23, %cst_8 [2] : vector<4x8x8xf32> to vector<4x8xf32>
    %25 = vector.shape_cast %24 : vector<4x8xf32> to vector<4x8x1xf32>
    %26 = vector.broadcast %25 : vector<4x8x1xf32> to vector<4x8x8xf32>
    %27 = arith.subf %23, %26 : vector<4x8x8xf32>
    %28 = math.exp %27 : vector<4x8x8xf32>
    %cst_9 = arith.constant dense<0.000000e+00> : vector<4x8xf32>
    %29 = vector.multi_reduction <add>, %28, %cst_9 [2] : vector<4x8x8xf32> to vector<4x8xf32>
    %30 = vector.shape_cast %29 : vector<4x8xf32> to vector<4x8x1xf32>
    %31 = tpu.reciprocal %30 {approx = true} : vector<4x8x1xf32> -> vector<4x8x1xf32>
    %32 = vector.broadcast %31 : vector<4x8x1xf32> to vector<4x8x8xf32>
    %33 = arith.mulf %28, %32 : vector<4x8x8xf32>
    %34 = arith.truncf %33 : vector<4x8x8xf32> to vector<4x8x8xbf16>
    "tpu.trace_start"() <{level = 10 : i32, message = "gqk,gkh->gqh"}> : () -> ()
    %cst_10 = arith.constant dense<0.000000e+00> : vector<4x8x32xf32>
    %35 = tpu.matmul %34, %18, %cst_10 {dimension_numbers = #tpu.dot_dimension_numbers<[2], [1], [1], [2], [0, 0, 0, 1, 1, 2], [0], [0]>} : vector<4x8x8xbf16>, vector<4x8x32xbf16>, vector<4x8x32xf32> -> vector<4x8x32xf32>
    "tpu.trace_stop"() : () -> ()
    %36 = arith.truncf %35 : vector<4x8x32xf32> to vector<4x8x32xbf16>
    %c0_11 = arith.constant 0 : index
    %c0_12 = arith.constant 0 : index
    %c0_13 = arith.constant 0 : index
    %37 = vector.load %arg3[%c0_11, %c0_12, %c0_13] : memref<4x32x128xbf16, #tpu.memory_space<vmem>>, vector<4x32x128xbf16>
    "tpu.trace_start"() <{level = 10 : i32, message = "gqh,ghe->gqe"}> : () -> ()
    %cst_14 = arith.constant dense<0.000000e+00> : vector<4x8x128xf32>
    %38 = tpu.matmul %36, %37, %cst_14 {dimension_numbers = #tpu.dot_dimension_numbers<[2], [1], [1], [2], [0, 0, 0, 1, 1, 2], [0], [0]>} : vector<4x8x32xbf16>, vector<4x32x128xbf16>, vector<4x8x128xf32> -> vector<4x8x128xf32>
    "tpu.trace_stop"() : () -> ()
    %cst_15 = arith.constant dense<0.000000e+00> : vector<8x128xf32>
    %39 = vector.multi_reduction <add>, %38, %cst_15 [0] : vector<4x8x128xf32> to vector<8x128xf32>
    %c0_16 = arith.constant 0 : index
    %c0_17 = arith.constant 0 : index
    %40 = vector.load %arg4[%c0_16, %c0_17] : memref<1x128xf32, #tpu.memory_space<vmem>>, vector<1x128xf32>
    %41 = vector.broadcast %40 : vector<1x128xf32> to vector<8x128xf32>
    %42 = arith.addf %39, %41 : vector<8x128xf32>
    %c0_18 = arith.constant 0 : index
    %c0_19 = arith.constant 0 : index
    %c0_20 = arith.constant 0 : index
    %43 = vector.load %arg5[%c0_18, %c0_19, %c0_20] : memref<2x8x128xf32, #tpu.memory_space<vmem>>, vector<1x8x128xf32>
    %44 = vector.shape_cast %43 : vector<1x8x128xf32> to vector<8x128xf32>
    %45 = vector.shape_cast %42 : vector<8x128xf32> to vector<1x8x128xf32>
    tpu.vector_store %arg5[%c0_18, %c0_19, %c0_20], %45 {strides = array<i32>} : memref<2x8x128xf32, #tpu.memory_space<vmem>>, vector<1x8x128xf32>,
    %c1 = arith.constant 1 : index
    %c0_21 = arith.constant 0 : index
    %c0_22 = arith.constant 0 : index
    %46 = vector.load %arg1[%c1, %c0_21, %c0_22] : memref<2x8x128xf32, #tpu.memory_space<vmem>>, vector<1x8x128xf32>
    %47 = vector.shape_cast %46 : vector<1x8x128xf32> to vector<8x128xf32>
    %48 = arith.truncf %47 : vector<8x128xf32> to vector<8x128xbf16>
    %49 = vector.shape_cast %48 : vector<8x128xbf16> to vector<1x8x128xbf16>
    %50 = vector.broadcast %49 : vector<1x8x128xbf16> to vector<12x8x128xbf16>
    %c0_23 = arith.constant 0 : index
    %c0_24 = arith.constant 0 : index
    %c0_25 = arith.constant 0 : index
    %51 = vector.load %arg2[%c0_23, %c0_24, %c0_25] : memref<12x32x128xbf16, #tpu.memory_space<vmem>>, vector<12x32x128xbf16>
    "tpu.trace_start"() <{level = 10 : i32, message = "gte,ghe->gth"}> : () -> ()
    %cst_26 = arith.constant dense<0.000000e+00> : vector<12x8x32xf32>
    %52 = tpu.matmul %50, %51, %cst_26 {dimension_numbers = #tpu.dot_dimension_numbers<[2], [2], [1], [1], [0, 0, 0, 1, 1, 1], [0], [0]>} : vector<12x8x128xbf16>, vector<12x32x128xbf16>, vector<12x8x32xf32> -> vector<12x8x32xf32>
    "tpu.trace_stop"() : () -> ()
    %53 = vector.extract_strided_slice %52 {offsets = [0, 0, 0], sizes = [4, 8, 32], strides = [1, 1, 1]} : vector<12x8x32xf32> to vector<4x8x32xf32>
    %cst_27 = arith.constant 0.0883883461 : f32
    %54 = vector.broadcast %cst_27 : f32 to vector<4x8x32xf32>
    %55 = arith.mulf %53, %54 : vector<4x8x32xf32>
    %56 = arith.truncf %55 : vector<4x8x32xf32> to vector<4x8x32xbf16>
    %57 = vector.extract_strided_slice %52 {offsets = [4, 0, 0], sizes = [4, 8, 32], strides = [1, 1, 1]} : vector<12x8x32xf32> to vector<4x8x32xf32>
    %58 = arith.truncf %57 : vector<4x8x32xf32> to vector<4x8x32xbf16>
    %59 = vector.extract_strided_slice %52 {offsets = [8, 0, 0], sizes = [4, 8, 32], strides = [1, 1, 1]} : vector<12x8x32xf32> to vector<4x8x32xf32>
    %60 = arith.truncf %59 : vector<4x8x32xf32> to vector<4x8x32xbf16>
    "tpu.trace_start"() <{level = 10 : i32, message = "gqh,gkh->gqk"}> : () -> ()
    %cst_28 = arith.constant dense<0.000000e+00> : vector<4x8x8xf32>
    %61 = tpu.matmul %56, %58, %cst_28 {dimension_numbers = #tpu.dot_dimension_numbers<[2], [2], [1], [1], [0, 0, 0, 1, 1, 1], [0], [0]>} : vector<4x8x32xbf16>, vector<4x8x32xbf16>, vector<4x8x8xf32> -> vector<4x8x8xf32>
    %cst_29 = arith.constant -1.000000e+30 : f32
    "tpu.trace_stop"() : () -> ()
    %62 = vector.shape_cast %3 : vector<1x8x8xi1> to vector<1x8x8xi1>
    %63 = vector.broadcast %62 : vector<1x8x8xi1> to vector<4x8x8xi1>
    %64 = vector.broadcast %cst_29 : f32 to vector<4x8x8xf32>
    %65 = arith.select %63, %61, %64 : vector<4x8x8xi1>, vector<4x8x8xf32>
    %cst_30 = arith.constant dense<0xFF800000> : vector<4x8xf32>
    %66 = vector.multi_reduction <maximumf>, %65, %cst_30 [2] : vector<4x8x8xf32> to vector<4x8xf32>
    %67 = vector.shape_cast %66 : vector<4x8xf32> to vector<4x8x1xf32>
    %68 = vector.broadcast %67 : vector<4x8x1xf32> to vector<4x8x8xf32>
    %69 = arith.subf %65, %68 : vector<4x8x8xf32>
    %70 = math.exp %69 : vector<4x8x8xf32>
    %cst_31 = arith.constant dense<0.000000e+00> : vector<4x8xf32>
    %71 = vector.multi_reduction <add>, %70, %cst_31 [2] : vector<4x8x8xf32> to vector<4x8xf32>
    %72 = vector.shape_cast %71 : vector<4x8xf32> to vector<4x8x1xf32>
    %73 = tpu.reciprocal %72 {approx = true} : vector<4x8x1xf32> -> vector<4x8x1xf32>
    %74 = vector.broadcast %73 : vector<4x8x1xf32> to vector<4x8x8xf32>
    %75 = arith.mulf %70, %74 : vector<4x8x8xf32>
    %76 = arith.truncf %75 : vector<4x8x8xf32> to vector<4x8x8xbf16>
    "tpu.trace_start"() <{level = 10 : i32, message = "gqk,gkh->gqh"}> : () -> ()
    %cst_32 = arith.constant dense<0.000000e+00> : vector<4x8x32xf32>
    %77 = tpu.matmul %76, %60, %cst_32 {dimension_numbers = #tpu.dot_dimension_numbers<[2], [1], [1], [2], [0, 0, 0, 1, 1, 2], [0], [0]>} : vector<4x8x8xbf16>, vector<4x8x32xbf16>, vector<4x8x32xf32> -> vector<4x8x32xf32>
    "tpu.trace_stop"() : () -> ()
    %78 = arith.truncf %77 : vector<4x8x32xf32> to vector<4x8x32xbf16>
    %c0_33 = arith.constant 0 : index
    %c0_34 = arith.constant 0 : index
    %c0_35 = arith.constant 0 : index
    %79 = vector.load %arg3[%c0_33, %c0_34, %c0_35] : memref<4x32x128xbf16, #tpu.memory_space<vmem>>, vector<4x32x128xbf16>
    "tpu.trace_start"() <{level = 10 : i32, message = "gqh,ghe->gqe"}> : () -> ()
    %cst_36 = arith.constant dense<0.000000e+00> : vector<4x8x128xf32>
    %80 = tpu.matmul %78, %79, %cst_36 {dimension_numbers = #tpu.dot_dimension_numbers<[2], [1], [1], [2], [0, 0, 0, 1, 1, 2], [0], [0]>} : vector<4x8x32xbf16>, vector<4x32x128xbf16>, vector<4x8x128xf32> -> vector<4x8x128xf32>
    "tpu.trace_stop"() : () -> ()
    %cst_37 = arith.constant dense<0.000000e+00> : vector<8x128xf32>
    %81 = vector.multi_reduction <add>, %80, %cst_37 [0] : vector<4x8x128xf32> to vector<8x128xf32>
    %c0_38 = arith.constant 0 : index
    %c0_39 = arith.constant 0 : index
    %82 = vector.load %arg4[%c0_38, %c0_39] : memref<1x128xf32, #tpu.memory_space<vmem>>, vector<1x128xf32>
    %83 = vector.broadcast %82 : vector<1x128xf32> to vector<8x128xf32>
    %84 = arith.addf %81, %83 : vector<8x128xf32>
    %c1_40 = arith.constant 1 : index
    %c0_41 = arith.constant 0 : index
    %c0_42 = arith.constant 0 : index
    %85 = vector.load %arg5[%c1_40, %c0_41, %c0_42] : memref<2x8x128xf32, #tpu.memory_space<vmem>>, vector<1x8x128xf32>
    %86 = vector.shape_cast %85 : vector<1x8x128xf32> to vector<8x128xf32>
    %87 = vector.shape_cast %84 : vector<8x128xf32> to vector<1x8x128xf32>
    tpu.vector_store %arg5[%c1_40, %c0_41, %c0_42], %87 {strides = array<i32>} : memref<2x8x128xf32, #tpu.memory_space<vmem>>, vector<1x8x128xf32>,
    return
  }
  func.func @transform_0(%arg0: i32) -> (i32, i32, i32) {
    %c0_i32 = arith.constant 0 : i32
    %c0_i32_0 = arith.constant 0 : i32
    %c0_i32_1 = arith.constant 0 : i32
    return %arg0, %c0_i32, %c0_i32_0 : i32, i32, i32
  }
  func.func @transform_1(%arg0: i32) -> (i32, i32, i32) {
    %c0_i32 = arith.constant 0 : i32
    %c0_i32_0 = arith.constant 0 : i32
    %c0_i32_1 = arith.constant 0 : i32
    %c0_i32_2 = arith.constant 0 : i32
    return %c0_i32, %c0_i32_0, %c0_i32_1 : i32, i32, i32
  }
  func.func @transform_2(%arg0: i32) -> (i32, i32, i32) {
    %c0_i32 = arith.constant 0 : i32
    %c0_i32_0 = arith.constant 0 : i32
    %c0_i32_1 = arith.constant 0 : i32
    %c0_i32_2 = arith.constant 0 : i32
    return %c0_i32, %c0_i32_0, %c0_i32_1 : i32, i32, i32
  }
  func.func @transform_3(%arg0: i32) -> (i32, i32) {
    %c0_i32 = arith.constant 0 : i32
    %c0_i32_0 = arith.constant 0 : i32
    %c0_i32_1 = arith.constant 0 : i32
    return %c0_i32, %c0_i32_0 : i32, i32
  }
  func.func @transform_4(%arg0: i32) -> (i32, i32, i32) {
    %c0_i32 = arith.constant 0 : i32
    %c0_i32_0 = arith.constant 0 : i32
    %c0_i32_1 = arith.constant 0 : i32
    return %arg0, %c0_i32, %c0_i32_0 : i32, i32, i32
  }
}

</mosaic_0001>

<bundles_post_ra>
// kernel: tpu_custom_call.1
= control target key start
LH: loop header
LB: loop body
LE: loop exit
PB: predicated region body
PF: predicated region fallthrough
CT: control target
= control target key end

     0   :  { %9 = vsyncpa [#allocation3], 0  ;;  %s3982_s0 = inlined_call_operand.hbm [shape: f32[2,8,128], index: 0, kind: input, shape index: {}]   ;;  %s3983_s1 = inlined_call_operand.hbm [shape: bf16[12,32,128], index: 1, kind: input, shape index: {}]   ;;  %s3984_s2 = inlined_call_operand.hbm [shape: bf16[4,32,128], index: 2, kind: input, shape index: {}]   ;;  %s3985_s3 = inlined_call_operand.vmem [shape: f32[1,128], index: 3, kind: input, shape index: {}]   ;;  %s3986_s4 = inlined_call_operand.hbm [shape: f32[2,8,128], index: 4, kind: output, shape index: {}]  }
   0x1   :  { %10 = vsyncpa [#allocation6], 0 }
   0x2   :  { %11 = vsyncpa [#allocation4], 0  ;;  %s3584_s15 = smov [#allocation5]   ;;  %s3490_s19 = scalar_lea.hbm %s3983_s1, 3072 }
   0x3   :  { %s29_s16 = sshll.u32 %s3584_s15, 4  ;;  %p3491_p0 = scmp.ne.s32.totalorder %s3983_s1, %s3490_s19  ;;  %s30_s16 = int_to_ptr.vmem [resolvable:$true] %s29_s16 }
   0x4   :  { %p3494_p1 = scmp.lt.u32.totalorder %s3490_s19, %s3983_s1 }
   0x6   :  { %p3496_p2 = pnand %p3494_p1, %p3491_p0 }
   0x8   :  { %3499 = shalt.err (!%p3496_p2)
}
   0x9   :  { %s3500_s24 = scalar_lea.vmem %s30_s16, 3072  ;;  %p3505_p4 = scmp.lt.s32.totalorder %s30_s16, %s30_s16 }
   0xa   :  { %p3501_p3 = scmp.ne.s32.totalorder %s30_s16, %s3500_s24  ;;  %p3506_p5 = scmp.lt.s32.totalorder %s3500_s24, %s3500_s24 }
   0xc   :  { %p3507_p6 = por %p3506_p5, %p3505_p4 }
   0xe   :  { %p3508_p7 = pnand %p3507_p6, %p3501_p3 }
  0x10   :  { %3511 = shalt.err (!%p3508_p7)
}
  0x11   :  { %s3585_s25 = smov 64   ;;  %s3586_s26 = smov 4  }
  0x12   :  { %35 = dma.hbm_to_vmem [thread:$0]  %s3983_s1, 3072, %s30_s16, [#allocation6], %s3585_s25, %s3585_s25, %s3586_s26  }
  0x13   :  { %s3587_s29 = smov [#allocation2]   ;;  %s3512_s7 = scalar_lea.hbm %s3982_s0, 256 }
  0x14   :  { %s17_s30 = sshll.u32 %s3587_s29, 4  ;;  %p3513_p8 = scmp.ne.s32.totalorder %s3982_s0, %s3512_s7  ;;  %s18_s30 = int_to_ptr.vmem [resolvable:$true] %s17_s30 }
  0x15   :  { %p3516_p9 = scmp.lt.u32.totalorder %s3512_s7, %s3982_s0 }
  0x17   :  { %p3518_p10 = pnand %p3516_p9, %p3513_p8 }
  0x19   :  { %3521 = shalt.err (!%p3518_p10)
}
  0x1a   :  { %s3522_s12 = scalar_lea.vmem %s18_s30, 256  ;;  %p3527_p12 = scmp.lt.s32.totalorder %s18_s30, %s18_s30 }
  0x1b   :  { %p3523_p11 = scmp.ne.s32.totalorder %s18_s30, %s3522_s12  ;;  %p3528_p13 = scmp.lt.s32.totalorder %s3522_s12, %s3522_s12 }
  0x1d   :  { %p3529_p0 = por %p3528_p13, %p3527_p12 }
  0x1f   :  { %p3530_p1 = pnand %p3529_p0, %p3523_p11 }
  0x21   :  { %3533 = shalt.err (!%p3530_p1)
}
  0x22   :  { %s3588_s1 = smov 128   ;;  %s3589_s13 = smov 8  }
  0x23   :  { %23 = dma.hbm_to_vmem [thread:$0]  %s3982_s0, 256, %s18_s30, [#allocation3], %s3588_s1, %s3588_s1, %s3589_s13  }
  0x24   :  { %s3590_s16 = smov [#allocation7]   ;;  %s3534_s20 = scalar_lea.hbm %s3984_s2, 1024 }
  0x25   :  { %s41_s17 = sshll.u32 %s3590_s16, 4  ;;  %p3535_p2 = scmp.ne.s32.totalorder %s3984_s2, %s3534_s20  ;;  %s42_s17 = int_to_ptr.vmem [resolvable:$true] %s41_s17 }
  0x26   :  { %p3538_p3 = scmp.lt.u32.totalorder %s3534_s20, %s3984_s2 }
  0x28   :  { %p3540_p4 = pnand %p3538_p3, %p3535_p2 }
  0x2a   :  { %3543 = shalt.err (!%p3540_p4)
}
  0x2b   :  { %s3544_s27 = scalar_lea.vmem %s42_s17, 1024  ;;  %p3549_p6 = scmp.lt.s32.totalorder %s42_s17, %s42_s17 }
  0x2c   :  { %p3545_p5 = scmp.ne.s32.totalorder %s42_s17, %s3544_s27  ;;  %p3550_p7 = scmp.lt.s32.totalorder %s3544_s27, %s3544_s27 }
  0x2e   :  { %p3551_p8 = por %p3550_p7, %p3549_p6 }
  0x30   :  { %p3552_p9 = pnand %p3551_p8, %p3545_p5 }
  0x32   :  { %3555 = shalt.err (!%p3552_p9)
}
  0x33   :  { %47 = dma.hbm_to_vmem [thread:$0]  %s3984_s2, 1024, %s42_s17, [#allocation6], %s3585_s25, %s3585_s25, %s3586_s26  }
  0x34   :  { %3578 = dma.done.wait [#allocation3], 256  }
  0x35   :  { %3579 = vsyncadd [#allocation3], 4294967040 }
  0x36   :  { %3580 = dma.done.wait [#allocation6], 4096  }
  0x37   :  { %3581 = vsyncadd [#allocation6], 4294963200  ;;  %v3591_v0 = vmov 0.0   ;;  %vm3592_vm0 = vmmov 0   ;;  %v3394_v1 = vld [vmem:[#allocation5] sm:$0xff]   ;;  %v3395_v2 = vld [vmem:[#allocation5 + $0x10] sm:$0xff]  }
  0x38   :  { %3032 = vmatprep.subr.bf16.mxu0 %v3591_v0  ;;  %3040 = vmatprep.subr.bf16.mxu1 %v3591_v0  ;;  %v3396_v3 = vld [vmem:[#allocation5 + $0x8] sm:$0xff]   ;;  %v3397_v4 = vld [vmem:[#allocation5 + $0x18] sm:$0xff]   ;;  %v65_v5 = vld [vmem:[#allocation2] sm:$0xff]  ;;  %vm755_vm1 = vcmask 261120   ;;  %vm998_vm2 = vcmask 1043456   ;;  %vm946_vm4 = vcmask 64512  }
  0x39   :  { %3036 = vmatprep.mubr.msk.bf16.mxu0 %vm3592_vm0, %v3591_v0  ;;  %3044 = vmatprep.mubr.msk.bf16.mxu1 %vm3592_vm0, %v3591_v0  ;;  %v3674_v6 = vpack.c.bf16 %v65_v5, %v65_v5  ;;  %v3398_v7 = vld [vmem:[#allocation5 + $0x20] sm:$0xff]   ;;  %v3399_v8 = vld [vmem:[#allocation5 + $0x30] sm:$0xff]   ;;  %v3400_v9 = vld [vmem:[#allocation5 + $0x28] sm:$0xff]  }
  0x3a   :  { %3033 = vmatpush3.bf16.xpose.msra.mxu0 %v3394_v1  ;;  %3041 = vmatpush3.bf16.xpose.msra.mxu1 %v3395_v2  ;;  %v3401_v10 = vld [vmem:[#allocation5 + $0x38] sm:$0xff]   ;;  %v3402_v11 = vld [vmem:[#allocation5 + $0x40] sm:$0xff]   ;;  %v3403_v12 = vld [vmem:[#allocation5 + $0x50] sm:$0xff]  }
  0x3b   :  { %3034 = vmatprep.subr.bf16.mxu0 %v3591_v0  ;;  %3042 = vmatprep.subr.bf16.mxu1 %v3591_v0  ;;  %v3404_v13 = vld [vmem:[#allocation5 + $0x48] sm:$0xff]   ;;  %v3405_v14 = vld [vmem:[#allocation5 + $0x58] sm:$0xff]   ;;  %v3406_v15 = vld [vmem:[#allocation5 + $0x60] sm:$0xff]  }
  0x3c   :  { %v3407_v16 = vld [vmem:[#allocation5 + $0x70] sm:$0xff]   ;;  %v3408_v17 = vld [vmem:[#allocation5 + $0x68] sm:$0xff]   ;;  %v3409_v18 = vld [vmem:[#allocation5 + $0x78] sm:$0xff]  }
  0x3d   :  { %v3410_v19 = vld [vmem:[#allocation5 + $0x80] sm:$0xff]   ;;  %v3411_v20 = vld [vmem:[#allocation5 + $0x90] sm:$0xff]   ;;  %v3412_v21 = vld [vmem:[#allocation5 + $0x88] sm:$0xff]  }
  0x3e   :  { %v3413_v22 = vld [vmem:[#allocation5 + $0x98] sm:$0xff]   ;;  %v3414_v23 = vld [vmem:[#allocation5 + $0xa0] sm:$0xff]   ;;  %v3415_v24 = vld [vmem:[#allocation5 + $0xb0] sm:$0xff]  }
  0x3f   :  { %v3416_v25 = vld [vmem:[#allocation5 + $0xa8] sm:$0xff]   ;;  %v3417_v26 = vld [vmem:[#allocation5 + $0xb8] sm:$0xff]  }
  0x42   :  { %3035 = vmatpush3.bf16.xpose.msra.mxu0 %v3396_v3  ;;  %3043 = vmatpush3.bf16.xpose.msra.mxu1 %v3397_v4 }
  0x43   :  { %3048 = vmatprep.subr.bf16.mxu0 %v3591_v0  ;;  %3056 = vmatprep.subr.bf16.mxu1 %v3591_v0 }
  0x49   :  { %3037 = vmatmul.mubr.bf16.vlgmr.msra.gmra.mrb[0].mxu0 %v3674_v6  ;;  %3045 = vmatmul.mubr.bf16.vlgmr.msra.gmra.mrb[0].mxu1 %v3674_v6 }
  0x4a   :  { %3049 = vmatpush3.bf16.xpose.msra.mxu0 %v3398_v7  ;;  %3057 = vmatpush3.bf16.xpose.msra.mxu1 %v3399_v8 }
  0x4b   :  { %3050 = vmatprep.subr.bf16.mxu0 %v3591_v0  ;;  %3058 = vmatprep.subr.bf16.mxu1 %v3591_v0 }
  0x4c   :  { %3052 = vmatprep.mubr.msk.bf16.mxu0 %vm3592_vm0, %v3591_v0  ;;  %3060 = vmatprep.mubr.msk.bf16.mxu1 %vm3592_vm0, %v3591_v0 }
  0x52   :  { %3051 = vmatpush3.bf16.xpose.msra.mxu0 %v3400_v9  ;;  %3059 = vmatpush3.bf16.xpose.msra.mxu1 %v3401_v10 }
  0x53   :  { %3064 = vmatprep.subr.bf16.mxu0 %v3591_v0  ;;  %3072 = vmatprep.subr.bf16.mxu1 %v3591_v0 }
  0x59   :  { %3053 = vmatmul.mubr.bf16.vlgmr.msra.gmra.mrb[4].mxu0 %v3674_v6  ;;  %3061 = vmatmul.mubr.bf16.vlgmr.msra.gmra.mrb[4].mxu1 %v3674_v6 }
  0x5a   :  { %3065 = vmatpush3.bf16.xpose.msra.mxu0 %v3402_v11  ;;  %3073 = vmatpush3.bf16.xpose.msra.mxu1 %v3403_v12 }
  0x5b   :  { %3066 = vmatprep.subr.bf16.mxu0 %v3591_v0  ;;  %3074 = vmatprep.subr.bf16.mxu1 %v3591_v0 }
  0x5c   :  { %3068 = vmatprep.mubr.msk.bf16.mxu0 %vm3592_vm0, %v3591_v0  ;;  %3076 = vmatprep.mubr.msk.bf16.mxu1 %vm3592_vm0, %v3591_v0 }
  0x62   :  { %3067 = vmatpush3.bf16.xpose.msra.mxu0 %v3404_v13  ;;  %3075 = vmatpush3.bf16.xpose.msra.mxu1 %v3405_v14 }
  0x63   :  { %3080 = vmatprep.subr.bf16.mxu0 %v3591_v0  ;;  %3088 = vmatprep.subr.bf16.mxu1 %v3591_v0 }
  0x69   :  { %3069 = vmatmul.mubr.bf16.vlgmr.msra.gmra.mrb[8].mxu0 %v3674_v6  ;;  %3077 = vmatmul.mubr.bf16.vlgmr.msra.gmra.mrb[8].mxu1 %v3674_v6 }
  0x6a   :  { %3081 = vmatpush3.bf16.xpose.msra.mxu0 %v3406_v15  ;;  %3089 = vmatpush3.bf16.xpose.msra.mxu1 %v3407_v16 }
  0x6b   :  { %3082 = vmatprep.subr.bf16.mxu0 %v3591_v0  ;;  %3090 = vmatprep.subr.bf16.mxu1 %v3591_v0 }
  0x6c   :  { %3084 = vmatprep.mubr.msk.bf16.mxu0 %vm3592_vm0, %v3591_v0  ;;  %3092 = vmatprep.mubr.msk.bf16.mxu1 %vm3592_vm0, %v3591_v0 }
  0x72   :  { %3083 = vmatpush3.bf16.xpose.msra.mxu0 %v3408_v17  ;;  %3091 = vmatpush3.bf16.xpose.msra.mxu1 %v3409_v18 }
  0x73   :  { %3096 = vmatprep.subr.bf16.mxu0 %v3591_v0  ;;  %3104 = vmatprep.subr.bf16.mxu1 %v3591_v0 }
  0x79   :  { %3085 = vmatmul.mubr.bf16.vlgmr.msra.gmra.mrb[12].mxu0 %v3674_v6  ;;  %3093 = vmatmul.mubr.bf16.vlgmr.msra.gmra.mrb[12].mxu1 %v3674_v6 }
  0x7a   :  { %3100 = vmatprep.mubr.msk.bf16.mxu0 %vm3592_vm0, %v3591_v0  ;;  %3108 = vmatprep.mubr.msk.bf16.mxu1 %vm3592_vm0, %v3591_v0 }
  0x7b   :  { %3097 = vmatpush3.bf16.xpose.msra.mxu0 %v3410_v19  ;;  %3105 = vmatpush3.bf16.xpose.msra.mxu1 %v3411_v20 }
  0x7c   :  { %3098 = vmatprep.subr.bf16.mxu0 %v3591_v0  ;;  %3106 = vmatprep.subr.bf16.mxu1 %v3591_v0 }
  0x83   :  { %3099 = vmatpush3.bf16.xpose.msra.mxu0 %v3412_v21  ;;  %3107 = vmatpush3.bf16.xpose.msra.mxu1 %v3413_v22 }
  0x84   :  { %3112 = vmatprep.subr.bf16.mxu0 %v3591_v0  ;;  %3120 = vmatprep.subr.bf16.mxu1 %v3591_v0 }
  0x8a   :  { %3101 = vmatmul.mubr.bf16.vlgmr.msra.gmra.mrb[16].mxu0 %v3674_v6  ;;  %3109 = vmatmul.mubr.bf16.vlgmr.msra.gmra.mrb[16].mxu1 %v3674_v6 }
  0x8b   :  { %3113 = vmatpush3.bf16.xpose.msra.mxu0 %v3414_v23  ;;  %3121 = vmatpush3.bf16.xpose.msra.mxu1 %v3415_v24 }
  0x8c   :  { %3114 = vmatprep.subr.bf16.mxu0 %v3591_v0  ;;  %3122 = vmatprep.subr.bf16.mxu1 %v3591_v0 }
  0x8d   :  { %3116 = vmatprep.mubr.msk.bf16.mxu0 %vm3592_vm0, %v3591_v0  ;;  %3124 = vmatprep.mubr.msk.bf16.mxu1 %vm3592_vm0, %v3591_v0 }
  0x93   :  { %3115 = vmatpush3.bf16.xpose.msra.mxu0 %v3416_v25  ;;  %3123 = vmatpush3.bf16.xpose.msra.mxu1 %v3417_v26 }
  0x94   :  { %3128 = vmatprep.subr.bf16.mxu0 %v3591_v0  ;;  %3134 = vmatprep.subr.bf16.mxu1 %v3591_v0 }
  0x9a   :  { %3117 = vmatmul.mubr.bf16.vlgmr.msra.gmra.mrb[20].mxu0 %v3674_v6  ;;  %3125 = vmatmul.mubr.bf16.vlgmr.msra.gmra.mrb[20].mxu1 %v3674_v6 }
  0x9b   :  { %3130 = vmatprep.mubr.msk.bf16.mxu0 %vm3592_vm0, %v3591_v0  ;;  %3136 = vmatprep.mubr.msk.bf16.mxu1 %vm3592_vm0, %v3591_v0 }
 0x11c   :  { %v161_v27 = vpop.f32.mrb[0].mxu0  ;;  %v213_v29 = vpop.f32.mrb[0].mxu1 }
 0x11d   :  { %v3038_v28 = vpop.f32.mrb[1].mxu0  ;;  %v3046_v31 = vpop.f32.mrb[1].mxu1  ;;  %v739_v55 = vmul.f32 0.088388346, %v161_v27  ;;  %v740_v56 = vmul.f32 0.088388346, %v213_v29 }
 0x11e   :  { %v164_v30 = vpop.f32.mrb[2].mxu0  ;;  %v216_v33 = vpop.f32.mrb[2].mxu1 }
 0x11f   :  { %v3039_v32 = vpop.f32.mrb[3].mxu0  ;;  %v3047_v34 = vpop.f32.mrb[3].mxu1  ;;  %v743_v57 = vpack.c.bf16 %v739_v55, %v739_v55  ;;  %v744_v58 = vpack.c.bf16 %v740_v56, %v740_v56 }
 0x120   :  { %v60_v32 = vlaneseq }
 0x122   :  { %v61_v33 = vshrl.u32 %v60_v32, 7  ;;  %v63_v34 = vand.u32 127, %v60_v32 }
 0x124   :  { %vm3760_vm3 = vcmp.ge.s32.totalorder %v61_v33, %v63_v34  ;;  %v3418_v33 = vld [vmem:[#allocation7] sm:$0xff]  }
 0x12c   :  { %v265_v35 = vpop.f32.mrb[4].mxu0  ;;  %v317_v37 = vpop.f32.mrb[4].mxu1 }
 0x12d   :  { %v3054_v36 = vpop.f32.mrb[5].mxu0  ;;  %v3062_v39 = vpop.f32.mrb[5].mxu1  ;;  %v741_v8 = vmul.f32 0.088388346, %v265_v35  ;;  %v742_v9 = vmul.f32 0.088388346, %v317_v37 }
 0x12e   :  { %v268_v38 = vpop.f32.mrb[6].mxu0  ;;  %v320_v41 = vpop.f32.mrb[6].mxu1 }
 0x12f   :  { %v3055_v40 = vpop.f32.mrb[7].mxu0  ;;  %v3063_v42 = vpop.f32.mrb[7].mxu1  ;;  %v745_v10 = vpack.c.bf16 %v741_v8, %v741_v8  ;;  %v746_v11 = vpack.c.bf16 %v742_v9, %v742_v9 }
 0x13c   :  { %v369_v43 = vpop.f32.mrb[8].mxu0  ;;  %v421_v45 = vpop.f32.mrb[8].mxu1 }
 0x13d   :  { %v747_v44 = vpack.c.bf16 %v369_v43, %v369_v43  ;;  %v3070_v46 = vpop.f32.mrb[9].mxu0  ;;  %v748_v47 = vpack.c.bf16 %v421_v45, %v421_v45  ;;  %v3078_v49 = vpop.f32.mrb[9].mxu1 }
 0x13e   :  { %v372_v48 = vpop.f32.mrb[10].mxu0  ;;  %v424_v52 = vpop.f32.mrb[10].mxu1 }
 0x13f   :  { %v760_v50 = vsel %vm755_vm1, %v747_v44, 0  ;;  %v3071_v51 = vpop.f32.mrb[11].mxu0  ;;  %v806_v53 = vsel %vm755_vm1, %v748_v47, 0  ;;  %v3079_v54 = vpop.f32.mrb[11].mxu1 }
 0x140   :  { %3129 = vmatpush3.bf16.xpose.msra.mxu0 %v760_v50  ;;  %3135 = vmatpush3.bf16.xpose.msra.mxu1 %v806_v53 }
 0x141   :  { %3140 = vmatprep.subr.bf16.mxu0 %v3591_v0  ;;  %3146 = vmatprep.subr.bf16.mxu1 %v3591_v0 }
 0x147   :  { %3131 = vmatmul.mubr.msk.bf16.vlgmr.msra.gmra.mrb[24].mxu0 %vm755_vm1, %v743_v57  ;;  %3137 = vmatmul.mubr.msk.bf16.vlgmr.msra.gmra.mrb[24].mxu1 %vm755_vm1, %v744_v58 }
 0x148   :  { %3142 = vmatprep.mubr.msk.bf16.mxu0 %vm3592_vm0, %v3591_v0  ;;  %3148 = vmatprep.mubr.msk.bf16.mxu1 %vm3592_vm0, %v3591_v0 }
 0x14c   :  { %v473_v59 = vpop.f32.mrb[12].mxu0  ;;  %v525_v61 = vpop.f32.mrb[12].mxu1 }
 0x14d   :  { %v749_v60 = vpack.c.bf16 %v473_v59, %v473_v59  ;;  %v3086_v62 = vpop.f32.mrb[13].mxu0  ;;  %v750_v63 = vpack.c.bf16 %v525_v61, %v525_v61  ;;  %v3094_v2 = vpop.f32.mrb[13].mxu1 }
 0x14e   :  { %v476_v1 = vpop.f32.mrb[14].mxu0  ;;  %v528_v5 = vpop.f32.mrb[14].mxu1 }
 0x14f   :  { %v852_v3 = vsel %vm755_vm1, %v749_v60, 0  ;;  %v3087_v4 = vpop.f32.mrb[15].mxu0  ;;  %v898_v6 = vsel %vm755_vm1, %v750_v63, 0  ;;  %v3095_v7 = vpop.f32.mrb[15].mxu1 }
 0x150   :  { %3141 = vmatpush3.bf16.xpose.msra.mxu0 %v852_v3  ;;  %3147 = vmatpush3.bf16.xpose.msra.mxu1 %v898_v6 }
 0x151   :  { %3152 = vmatprep.subr.bf16.mxu0 %v3591_v0  ;;  %3158 = vmatprep.subr.bf16.mxu1 %v3591_v0 }
 0x157   :  { %3143 = vmatmul.mubr.msk.bf16.vlgmr.msra.gmra.mrb[28].mxu0 %vm755_vm1, %v745_v10  ;;  %3149 = vmatmul.mubr.msk.bf16.vlgmr.msra.gmra.mrb[28].mxu1 %vm755_vm1, %v746_v11 }
 0x158   :  { %3154 = vmatprep.mubr.msk.bf16.mxu0 %vm3592_vm0, %v3591_v0  ;;  %3160 = vmatprep.mubr.msk.bf16.mxu1 %vm3592_vm0, %v3591_v0 }
 0x15d   :  { %v577_v12 = vpop.f32.mrb[16].mxu0  ;;  %v629_v13 = vpop.f32.mrb[16].mxu1 }
 0x15e   :  { %v751_v14 = vpack.c.bf16 %v577_v12, %v577_v12  ;;  %v3102_v15 = vpop.f32.mrb[17].mxu0  ;;  %v752_v16 = vpack.c.bf16 %v629_v13, %v629_v13  ;;  %v3110_v17 = vpop.f32.mrb[17].mxu1 }
 0x15f   :  { %v580_v18 = vpop.f32.mrb[18].mxu0  ;;  %v632_v19 = vpop.f32.mrb[18].mxu1 }
 0x160   :  { %v1000_v20 = vsel %vm998_vm2, %v751_v14, 0  ;;  %v3103_v21 = vpop.f32.mrb[19].mxu0  ;;  %v1046_v22 = vsel %vm998_vm2, %v752_v16, 0  ;;  %v3111_v23 = vpop.f32.mrb[19].mxu1 }
 0x161   :  { %3153 = vmatpush3.bf16.msra.mxu0 %v1000_v20  ;;  %3159 = vmatpush3.bf16.msra.mxu1 %v1046_v22 }
 0x162   :  { %3164 = vmatprep.subr.bf16.mxu0 %v3591_v0  ;;  %3170 = vmatprep.subr.bf16.mxu1 %v3591_v0 }
 0x16d   :  { %v3756_v24 = vpop.f32.mrb[20].mxu0  ;;  %v3758_v25 = vpop.f32.mrb[20].mxu1 }
 0x16e   :  { %v3118_v26 = vpop.f32.mrb[21].mxu0  ;;  %v3126_v27 = vpop.f32.mrb[21].mxu1  ;;  %v753_v20 = vpack.c.bf16 %v3756_v24, %v3756_v24 }
 0x16f   :  { %v684_v28 = vpop.f32.mrb[22].mxu0  ;;  %v736_v29 = vpop.f32.mrb[22].mxu1  ;;  %v754_v27 = vpack.c.bf16 %v3758_v25, %v3758_v25 }
 0x170   :  { %v3119_v30 = vpop.f32.mrb[23].mxu0  ;;  %v3127_v31 = vpop.f32.mrb[23].mxu1  ;;  %v1092_v26 = vsel %vm998_vm2, %v753_v20, 0  ;;  %v3441_v20 = vld [vmem:[#allocation5 + $0x78] sm:$0xff]  }
 0x171   :  { %v1138_v24 = vsel %vm998_vm2, %v754_v27, 0  ;;  %v3446_v27 = vld [vmem:[#allocation5 + $0xa0] sm:$0xff]  }
 0x21a   :  { %v796_v36 = vpop.f32.mrb[24].mxu0  ;;  %v842_v38 = vpop.f32.mrb[24].mxu1 }
 0x21b   :  { %v942_v37 = vsel %vm3760_vm3, %v796_v36, -1e+30  ;;  %v3132_v39 = vpop.f32.mrb[25].mxu0  ;;  %v3138_v40 = vpop.f32.mrb[25].mxu1  ;;  %v943_v43 = vsel %vm3760_vm3, %v842_v38, -1e+30 }
 0x21c   :  { %v799_v41 = vpop.f32.mrb[26].mxu0  ;;  %v947_v42 = vsel %vm946_vm4, %v942_v37, -inf  ;;  %v845_v44 = vpop.f32.mrb[26].mxu1  ;;  %v950_v47 = vsel %vm946_vm4, %v943_v43, -inf  ;;  %v3419_v39 = vld [vmem:[#allocation7 + $0x8] sm:$0xff]   ;;  %v3420_v40 = vld [vmem:[#allocation7 + $0x10] sm:$0xff]  }
 0x21d   :  { %948 = vmax.xlane.f32.xlu0 %v947_v42  ;;  %v3133_v45 = vpop.f32.mrb[27].mxu0  ;;  %v3139_v46 = vpop.f32.mrb[27].mxu1  ;;  %v3421_v41 = vld [vmem:[#allocation7 + $0x18] sm:$0xff]  }
 0x221   :  { %951 = vmax.xlane.f32.xlu0 %v950_v47 }
 0x22a   :  { %v888_v48 = vpop.f32.mrb[28].mxu0  ;;  %v934_v50 = vpop.f32.mrb[28].mxu1 }
 0x22b   :  { %v944_v49 = vsel %vm3760_vm3, %v888_v48, -1e+30  ;;  %v3144_v51 = vpop.f32.mrb[29].mxu0  ;;  %v3150_v52 = vpop.f32.mrb[29].mxu1  ;;  %v945_v55 = vsel %vm3760_vm3, %v934_v50, -1e+30 }
 0x22c   :  { %v891_v53 = vpop.f32.mrb[30].mxu0  ;;  %v953_v54 = vsel %vm946_vm4, %v944_v49, -inf  ;;  %v937_v56 = vpop.f32.mrb[30].mxu1  ;;  %v956_v59 = vsel %vm946_vm4, %v945_v55, -inf  ;;  %v3424_v50 = vld [vmem:[#allocation7 + $0x30] sm:$0xff]  }
 0x22d   :  { %954 = vmax.xlane.f32.xlu1 %v953_v54  ;;  %v3145_v57 = vpop.f32.mrb[31].mxu0  ;;  %v3151_v58 = vpop.f32.mrb[31].mxu1 }
 0x22e   :  { %v3426_v57 = vld [vmem:[#allocation5] sm:$0xff]  }
 0x231   :  { %957 = vmax.xlane.f32.xlu1 %v956_v59 }
 0x2aa   :  { %v949_v60 = vpop.xlane.xlu0 %948 }
 0x2ab   :  { %v959_v61 = vsub.f32 %v942_v37, %v949_v60 }
 0x2ad   :  { %v963_v62 = vmul.f32 1.442695, %v959_v61 }
 0x2ae   :  { %v952_v63 = vpop.xlane.xlu0 %951 }
 0x2af   :  { %3458 = vpow2.f32 %v963_v62  ;;  %v960_v1 = vsub.f32 %v943_v43, %v952_v63  ;;  %v3422_v43 = vld [vmem:[#allocation7 + $0x20] sm:$0xff]   ;;  %v3427_v63 = vld [vmem:[#allocation5 + $0x10] sm:$0xff]  }
 0x2b1   :  { %v965_v2 = vmul.f32 1.442695, %v960_v1 }
 0x2b3   :  { %3460 = vpow2.f32 %v965_v2 }
 0x2b9   :  { %v3459_v3 = vpop.eup %3458 }
 0x2ba   :  { %v955_v4 = vpop.xlane.xlu1 %954  ;;  %v971_v5 = vsel %vm946_vm4, %v3459_v3, 0.0 }
 0x2bb   :  { %v961_v6 = vsub.f32 %v944_v49, %v955_v4  ;;  %972 = vadd.xlane.f32.xlu0 %v971_v5  ;;  %v3423_v49 = vld [vmem:[#allocation7 + $0x28] sm:$0xff]  }
 0x2bc   :  { %v3428_v5 = vld [vmem:[#allocation5 + $0x8] sm:$0xff]  }
 0x2bd   :  { %v3461_v7 = vpop.eup %3460  ;;  %v967_v8 = vmul.f32 1.442695, %v961_v6  ;;  %v3429_v6 = vld [vmem:[#allocation5 + $0x18] sm:$0xff]  }
 0x2be   :  { %v958_v9 = vpop.xlane.xlu1 %957  ;;  %v974_v10 = vsel %vm946_vm4, %v3461_v7, 0.0 }
 0x2bf   :  { %3462 = vpow2.f32 %v967_v8  ;;  %v962_v11 = vsub.f32 %v945_v55, %v958_v9  ;;  %975 = vadd.xlane.f32.xlu1 %v974_v10  ;;  %v3425_v55 = vld [vmem:[#allocation7 + $0x38] sm:$0xff]   ;;  %v3430_v9 = vld [vmem:[#allocation5 + $0x20] sm:$0xff]   ;;  %v3431_v10 = vld [vmem:[#allocation5 + $0x30] sm:$0xff]  }
 0x2c1   :  { %v969_v12 = vmul.f32 1.442695, %v962_v11  ;;  %v3432_v11 = vld [vmem:[#allocation5 + $0x28] sm:$0xff]  }
 0x2c3   :  { %3464 = vpow2.f32 %v969_v12  ;;  %v3433_v12 = vld [vmem:[#allocation5 + $0x38] sm:$0xff]  }
 0x2c9   :  { %v3463_v13 = vpop.eup %3462 }
 0x2ca   :  { %v977_v14 = vsel %vm946_vm4, %v3463_v13, 0.0 }
 0x2cb   :  { %978 = vadd.xlane.f32.xlu0 %v977_v14  ;;  %v3435_v14 = vld [vmem:[#allocation5 + $0x50] sm:$0xff]  }
 0x2cd   :  { %v3465_v15 = vpop.eup %3464 }
 0x2ce   :  { %v980_v16 = vsel %vm946_vm4, %v3465_v15, 0.0 }
 0x2cf   :  { %981 = vadd.xlane.f32.xlu1 %v980_v16  ;;  %v3437_v16 = vld [vmem:[#allocation5 + $0x58] sm:$0xff]  }
 0x348   :  { %v973_v17 = vpop.xlane.xlu0 %972 }
 0x349   :  { %3466 = vrcp.f32 %v973_v17  ;;  %v3438_v17 = vld [vmem:[#allocation5 + $0x60] sm:$0xff]  }
 0x34c   :  { %v976_v18 = vpop.xlane.xlu1 %975 }
 0x34d   :  { %3468 = vrcp.f32 %v976_v18  ;;  %v3439_v18 = vld [vmem:[#allocation5 + $0x70] sm:$0xff]  }
 0x353   :  { %v3467_v19 = vpop.eup %3466 }
 0x354   :  { %v987_v21 = vmul.f32 %v3467_v19, %v3459_v3  ;;  %v3440_v19 = vld [vmem:[#allocation5 + $0x68] sm:$0xff]  }
 0x356   :  { %v991_v22 = vpack.c.bf16 %v987_v21, %v987_v21  ;;  %v3442_v21 = vld [vmem:[#allocation5 + $0x80] sm:$0xff]  }
 0x357   :  { %v3469_v23 = vpop.eup %3468 }
 0x358   :  { %v988_v28 = vmul.f32 %v3469_v23, %v3461_v7  ;;  %3155 = vmatmul.mubr.msk.bf16.vlgmr.msra.gmra.mrb[32].mxu0 %vm946_vm4, %v991_v22  ;;  %v979_v29 = vpop.xlane.xlu0 %978  ;;  %v1433_v7 = vld [vmem:[#allocation2 + $0x8] sm:$0xff]  ;;  %v3443_v22 = vld [vmem:[#allocation5 + $0x90] sm:$0xff]   ;;  %v3444_v23 = vld [vmem:[#allocation5 + $0x88] sm:$0xff]  }
 0x359   :  { %3165 = vmatpush3.bf16.msra.mxu0 %v1092_v26  ;;  %3470 = vrcp.f32 %v979_v29  ;;  %3166 = vmatprep.mubr.msk.bf16.mxu0 %vm3592_vm0, %v3591_v0  ;;  %v3823_v8 = vpack.c.bf16 %v1433_v7, %v1433_v7  ;;  %v3445_v26 = vld [vmem:[#allocation5 + $0x98] sm:$0xff]   ;;  %v3448_v29 = vld [vmem:[#allocation5 + $0xa8] sm:$0xff]  }
 0x35a   :  { %v992_v30 = vpack.c.bf16 %v988_v28, %v988_v28  ;;  %3176 = vmatprep.subr.bf16.mxu0 %v3591_v0  ;;  %v3447_v28 = vld [vmem:[#allocation5 + $0xb0] sm:$0xff]  }
 0x35c   :  { %3161 = vmatmul.mubr.msk.bf16.vlgmr.msra.gmra.mrb[32].mxu1 %vm946_vm4, %v992_v30  ;;  %v982_v31 = vpop.xlane.xlu1 %981  ;;  %v3449_v30 = vld [vmem:[#allocation5 + $0xb8] sm:$0xff]  }
 0x35d   :  { %3171 = vmatpush3.bf16.msra.mxu1 %v1138_v24  ;;  %3472 = vrcp.f32 %v982_v31  ;;  %3172 = vmatprep.mubr.msk.bf16.mxu1 %vm3592_vm0, %v3591_v0 }
 0x35e   :  { %3184 = vmatprep.subr.bf16.mxu1 %v3591_v0 }
 0x363   :  { %v3471_v25 = vpop.eup %3470 }
 0x364   :  { %v989_v32 = vmul.f32 %v3471_v25, %v3463_v13  ;;  %v3434_v13 = vld [vmem:[#allocation5 + $0x40] sm:$0xff]  }
 0x366   :  { %v993_v34 = vpack.c.bf16 %v989_v32, %v989_v32 }
 0x367   :  { %v3473_v36 = vpop.eup %3472 }
 0x368   :  { %v990_v37 = vmul.f32 %v3473_v36, %v3465_v15  ;;  %3167 = vmatmul.mubr.msk.bf16.vlgmr.msra.gmra.mrb[36].mxu0 %vm946_vm4, %v993_v34  ;;  %v3436_v15 = vld [vmem:[#allocation5 + $0x48] sm:$0xff]  }
 0x369   :  { %3177 = vmatpush3.bf16.msra.mxu0 %v3418_v33  ;;  %3180 = vmatprep.mubr.msk.bf16.mxu0 %vm3592_vm0, %v3591_v0 }
 0x36a   :  { %v994_v38 = vpack.c.bf16 %v990_v37, %v990_v37  ;;  %3178 = vmatprep.subr.bf16.mxu0 %v3591_v0 }
 0x36c   :  { %3173 = vmatmul.mubr.msk.bf16.vlgmr.msra.gmra.mrb[36].mxu1 %vm946_vm4, %v994_v38 }
 0x36d   :  { %3188 = vmatprep.mubr.msk.bf16.mxu1 %vm3592_vm0, %v3591_v0  ;;  %3179 = vmatpush3.bf16.msra.mxu0 %v3419_v39 }
 0x36e   :  { %3185 = vmatpush3.bf16.msra.mxu1 %v3420_v40  ;;  %3192 = vmatprep.subr.bf16.mxu0 %v3591_v0 }
 0x36f   :  { %3186 = vmatprep.subr.bf16.mxu1 %v3591_v0 }
 0x372   :  { %3187 = vmatpush3.bf16.msra.mxu1 %v3421_v41 }
 0x373   :  { %3200 = vmatprep.subr.bf16.mxu1 %v3591_v0 }
 0x42b   :  { %v1036_v42 = vpop.f32.mrb[32].mxu0 }
 0x42c   :  { %v1180_v44 = vpack.c.bf16 %v1036_v42, %v1036_v42  ;;  %v3156_v45 = vpop.f32.mrb[33].mxu0 }
 0x42d   :  { %v1039_v46 = vpop.f32.mrb[34].mxu0  ;;  %v3885_v45 = vld [vmem:[%s3985_s3] ss:$0 sm:$0xff]  ;;  %s3593_s3 = smov [#allocation8]  }
 0x42e   :  { %v3157_v47 = vpop.f32.mrb[35].mxu0  ;;  %3181 = vmatmul.mubr.msk.bf16.vlgmr.msra.gmra.mrb[40].mxu0 %vm755_vm1, %v1180_v44  ;;  %s2801_s26 = sshll.u32 %s3593_s3, 4  ;;  %s2802_s26 = int_to_ptr.vmem [resolvable:$true] %s2801_s26 }
 0x42f   :  { %v1082_v48 = vpop.f32.mrb[32].mxu1  ;;  %3193 = vmatpush3.bf16.msra.mxu0 %v3422_v43  ;;  %3196 = vmatprep.mubr.msk.bf16.mxu0 %vm3592_vm0, %v3591_v0  ;;  %s3556_s29 = scalar_lea.vmem %s2802_s26, 256  ;;  %p3561_p11 = scmp.lt.s32.totalorder %s2802_s26, %s2802_s26 }
 0x430   :  { %v1181_v51 = vpack.c.bf16 %v1082_v48, %v1082_v48  ;;  %v3162_v52 = vpop.f32.mrb[33].mxu1  ;;  %3194 = vmatprep.subr.bf16.mxu0 %v3591_v0  ;;  %p3557_p10 = scmp.ne.s32.totalorder %s2802_s26, %s3556_s29  ;;  %p3562_p12 = scmp.lt.s32.totalorder %s3556_s29, %s3556_s29 }
 0x431   :  { %v1085_v53 = vpop.f32.mrb[34].mxu1 }
 0x432   :  { %v3163_v54 = vpop.f32.mrb[35].mxu1  ;;  %3189 = vmatmul.mubr.msk.bf16.vlgmr.msra.gmra.mrb[40].mxu1 %vm755_vm1, %v1181_v51  ;;  %p3563_p13 = por %p3562_p12, %p3561_p11 }
 0x433   :  { %3195 = vmatpush3.bf16.msra.mxu0 %v3423_v49  ;;  %3201 = vmatpush3.bf16.msra.mxu1 %v3424_v50 }
 0x434   :  { %3202 = vmatprep.subr.bf16.mxu1 %v3591_v0  ;;  %3208 = vmatprep.subr.bf16.mxu0 %v3591_v0  ;;  %p3564_p0 = pnand %p3563_p13, %p3557_p10 }
 0x435   :  { %3204 = vmatprep.mubr.msk.bf16.mxu1 %vm3592_vm0, %v3591_v0 }
 0x437   :  { %3203 = vmatpush3.bf16.msra.mxu1 %v3425_v55 }
 0x438   :  { %3216 = vmatprep.subr.bf16.mxu1 %v3591_v0 }
 0x43b   :  { %v1128_v56 = vpop.f32.mrb[36].mxu0 }
 0x43c   :  { %v1182_v58 = vpack.c.bf16 %v1128_v56, %v1128_v56  ;;  %v3168_v59 = vpop.f32.mrb[37].mxu0 }
 0x43d   :  { %v1131_v60 = vpop.f32.mrb[38].mxu0 }
 0x43e   :  { %v3169_v61 = vpop.f32.mrb[39].mxu0  ;;  %3197 = vmatmul.mubr.msk.bf16.vlgmr.msra.gmra.mrb[44].mxu0 %vm755_vm1, %v1182_v58 }
 0x43f   :  { %3209 = vmatpush3.bf16.xpose.msra.mxu0 %v3426_v57  ;;  %v1174_v62 = vpop.f32.mrb[36].mxu1  ;;  %3212 = vmatprep.mubr.msk.bf16.mxu0 %vm3592_vm0, %v3591_v0 }
 0x440   :  { %v1183_v1 = vpack.c.bf16 %v1174_v62, %v1174_v62  ;;  %v3174_v2 = vpop.f32.mrb[37].mxu1  ;;  %3210 = vmatprep.subr.bf16.mxu0 %v3591_v0 }
 0x441   :  { %v1177_v3 = vpop.f32.mrb[38].mxu1 }
 0x442   :  { %v3175_v4 = vpop.f32.mrb[39].mxu1  ;;  %3205 = vmatmul.mubr.msk.bf16.vlgmr.msra.gmra.mrb[44].mxu1 %vm755_vm1, %v1183_v1 }
 0x443   :  { %3217 = vmatpush3.bf16.xpose.msra.mxu1 %v3427_v63  ;;  %3220 = vmatprep.mubr.msk.bf16.mxu1 %vm3592_vm0, %v3591_v0 }
 0x444   :  { %3218 = vmatprep.subr.bf16.mxu1 %v3591_v0 }
 0x447   :  { %3211 = vmatpush3.bf16.xpose.msra.mxu0 %v3428_v5 }
 0x448   :  { %3224 = vmatprep.subr.bf16.mxu0 %v3591_v0 }
 0x44b   :  { %3219 = vmatpush3.bf16.xpose.msra.mxu1 %v3429_v6 }
 0x44c   :  { %3232 = vmatprep.subr.bf16.mxu1 %v3591_v0 }
 0x44e   :  { %3213 = vmatmul.mubr.bf16.vlgmr.msra.gmra.mrb[48].mxu0 %v3823_v8 }
 0x44f   :  { %3225 = vmatpush3.bf16.xpose.msra.mxu0 %v3430_v9  ;;  %3228 = vmatprep.mubr.msk.bf16.mxu0 %vm3592_vm0, %v3591_v0 }
 0x450   :  { %3226 = vmatprep.subr.bf16.mxu0 %v3591_v0 }
 0x452   :  { %3221 = vmatmul.mubr.bf16.vlgmr.msra.gmra.mrb[48].mxu1 %v3823_v8 }
 0x453   :  { %3233 = vmatpush3.bf16.xpose.msra.mxu1 %v3431_v10  ;;  %3236 = vmatprep.mubr.msk.bf16.mxu1 %vm3592_vm0, %v3591_v0 }
 0x454   :  { %3234 = vmatprep.subr.bf16.mxu1 %v3591_v0 }
 0x457   :  { %3227 = vmatpush3.bf16.xpose.msra.mxu0 %v3432_v11 }
 0x458   :  { %3240 = vmatprep.subr.bf16.mxu0 %v3591_v0 }
 0x45b   :  { %3235 = vmatpush3.bf16.xpose.msra.mxu1 %v3433_v12 }
 0x45c   :  { %3248 = vmatprep.subr.bf16.mxu1 %v3591_v0 }
 0x45e   :  { %3229 = vmatmul.mubr.bf16.vlgmr.msra.gmra.mrb[52].mxu0 %v3823_v8 }
 0x45f   :  { %3241 = vmatpush3.bf16.xpose.msra.mxu0 %v3434_v13  ;;  %3244 = vmatprep.mubr.msk.bf16.mxu0 %vm3592_vm0, %v3591_v0 }
 0x460   :  { %3242 = vmatprep.subr.bf16.mxu0 %v3591_v0 }
 0x462   :  { %3237 = vmatmul.mubr.bf16.vlgmr.msra.gmra.mrb[52].mxu1 %v3823_v8 }
 0x463   :  { %3249 = vmatpush3.bf16.xpose.msra.mxu1 %v3435_v14  ;;  %3252 = vmatprep.mubr.msk.bf16.mxu1 %vm3592_vm0, %v3591_v0 }
 0x464   :  { %3250 = vmatprep.subr.bf16.mxu1 %v3591_v0 }
 0x467   :  { %3243 = vmatpush3.bf16.xpose.msra.mxu0 %v3436_v15 }
 0x468   :  { %3256 = vmatprep.subr.bf16.mxu0 %v3591_v0 }
 0x46b   :  { %3251 = vmatpush3.bf16.xpose.msra.mxu1 %v3437_v16 }
 0x46c   :  { %3264 = vmatprep.subr.bf16.mxu1 %v3591_v0 }
 0x46e   :  { %3245 = vmatmul.mubr.bf16.vlgmr.msra.gmra.mrb[56].mxu0 %v3823_v8 }
 0x46f   :  { %3257 = vmatpush3.bf16.xpose.msra.mxu0 %v3438_v17  ;;  %3260 = vmatprep.mubr.msk.bf16.mxu0 %vm3592_vm0, %v3591_v0 }
 0x470   :  { %3258 = vmatprep.subr.bf16.mxu0 %v3591_v0 }
 0x472   :  { %3253 = vmatmul.mubr.bf16.vlgmr.msra.gmra.mrb[56].mxu1 %v3823_v8 }
 0x473   :  { %3265 = vmatpush3.bf16.xpose.msra.mxu1 %v3439_v18  ;;  %3268 = vmatprep.mubr.msk.bf16.mxu1 %vm3592_vm0, %v3591_v0 }
 0x474   :  { %3266 = vmatprep.subr.bf16.mxu1 %v3591_v0 }
 0x477   :  { %3259 = vmatpush3.bf16.xpose.msra.mxu0 %v3440_v19 }
 0x478   :  { %3272 = vmatprep.subr.bf16.mxu0 %v3591_v0 }
 0x47b   :  { %3267 = vmatpush3.bf16.xpose.msra.mxu1 %v3441_v20 }
 0x47c   :  { %3280 = vmatprep.subr.bf16.mxu1 %v3591_v0 }
 0x47e   :  { %3261 = vmatmul.mubr.bf16.vlgmr.msra.gmra.mrb[60].mxu0 %v3823_v8 }
 0x47f   :  { %3276 = vmatprep.mubr.msk.bf16.mxu0 %vm3592_vm0, %v3591_v0  ;;  %3273 = vmatpush3.bf16.xpose.msra.mxu0 %v3442_v21 }
 0x480   :  { %3274 = vmatprep.subr.bf16.mxu0 %v3591_v0 }
 0x482   :  { %3269 = vmatmul.mubr.bf16.vlgmr.msra.gmra.mrb[60].mxu1 %v3823_v8 }
 0x483   :  { %3284 = vmatprep.mubr.msk.bf16.mxu1 %vm3592_vm0, %v3591_v0  ;;  %3281 = vmatpush3.bf16.xpose.msra.mxu1 %v3443_v22 }
 0x484   :  { %3282 = vmatprep.subr.bf16.mxu1 %v3591_v0 }
 0x487   :  { %3275 = vmatpush3.bf16.xpose.msra.mxu0 %v3444_v23 }
 0x488   :  { %3288 = vmatprep.subr.bf16.mxu0 %v3591_v0 }
 0x48b   :  { %3283 = vmatpush3.bf16.xpose.msra.mxu1 %v3445_v26 }
 0x48c   :  { %3296 = vmatprep.subr.bf16.mxu1 %v3591_v0 }
 0x48e   :  { %3277 = vmatmul.mubr.bf16.vlgmr.msra.gmra.mrb[64].mxu0 %v3823_v8 }
 0x48f   :  { %3289 = vmatpush3.bf16.xpose.msra.mxu0 %v3446_v27  ;;  %3292 = vmatprep.mubr.msk.bf16.mxu0 %vm3592_vm0, %v3591_v0 }
 0x490   :  { %3290 = vmatprep.subr.bf16.mxu0 %v3591_v0 }
 0x492   :  { %3285 = vmatmul.mubr.bf16.vlgmr.msra.gmra.mrb[64].mxu1 %v3823_v8 }
 0x493   :  { %3297 = vmatpush3.bf16.xpose.msra.mxu1 %v3447_v28  ;;  %3300 = vmatprep.mubr.msk.bf16.mxu1 %vm3592_vm0, %v3591_v0 }
 0x494   :  { %3298 = vmatprep.subr.bf16.mxu1 %v3591_v0 }
 0x497   :  { %3291 = vmatpush3.bf16.xpose.msra.mxu0 %v3448_v29 }
 0x498   :  { %3304 = vmatprep.subr.bf16.mxu0 %v3591_v0 }
 0x49b   :  { %3299 = vmatpush3.bf16.xpose.msra.mxu1 %v3449_v30 }
 0x49c   :  { %3310 = vmatprep.subr.bf16.mxu1 %v3591_v0 }
 0x49e   :  { %3293 = vmatmul.mubr.bf16.vlgmr.msra.gmra.mrb[68].mxu0 %v3823_v8 }
 0x49f   :  { %3306 = vmatprep.mubr.msk.bf16.mxu0 %vm3592_vm0, %v3591_v0 }
 0x4a2   :  { %3301 = vmatmul.mubr.bf16.vlgmr.msra.gmra.mrb[68].mxu1 %v3823_v8 }
 0x4a3   :  { %3312 = vmatprep.mubr.msk.bf16.mxu1 %vm3592_vm0, %v3591_v0 }
 0x501   :  { %v1249_v24 = vpop.f32.mrb[40].mxu0 }
 0x502   :  { %v3182_v31 = vpop.f32.mrb[41].mxu0 }
 0x503   :  { %v1252_v25 = vpop.f32.mrb[42].mxu0 }
 0x504   :  { %v3183_v32 = vpop.f32.mrb[43].mxu0 }
 0x505   :  { %v1304_v33 = vpop.f32.mrb[40].mxu1 }
 0x506   :  { %v1420_v34 = vadd.f32 %v1304_v33, %v1249_v24  ;;  %v3190_v36 = vpop.f32.mrb[41].mxu1 }
 0x507   :  { %v1307_v37 = vpop.f32.mrb[42].mxu1 }
 0x508   :  { %v3191_v38 = vpop.f32.mrb[43].mxu1 }
 0x511   :  { %v1359_v39 = vpop.f32.mrb[44].mxu0 }
 0x512   :  { %v1421_v40 = vadd.f32 %v1420_v34, %v1359_v39  ;;  %v3198_v41 = vpop.f32.mrb[45].mxu0 }
 0x513   :  { %v1362_v42 = vpop.f32.mrb[46].mxu0 }
 0x514   :  { %v3199_v43 = vpop.f32.mrb[47].mxu0 }
 0x515   :  { %v1414_v44 = vpop.f32.mrb[44].mxu1 }
 0x516   :  { %v1422_v46 = vadd.f32 %v1421_v40, %v1414_v44  ;;  %v3206_v47 = vpop.f32.mrb[45].mxu1 }
 0x517   :  { %v1417_v48 = vpop.f32.mrb[46].mxu1 }
 0x518   :  { %v1430_v49 = vadd.f32 %v3885_v45, %v1422_v46  ;;  %v3207_v50 = vpop.f32.mrb[47].mxu1 }
 0x51a   :  { %1431 = vst [vmem:[#allocation8] sm:$0xff] %v1430_v49 }
 0x521   :  { %v1529_v51 = vpop.f32.mrb[48].mxu0 }
 0x522   :  { %v3214_v52 = vpop.f32.mrb[49].mxu0  ;;  %v2107_v11 = vmul.f32 0.088388346, %v1529_v51 }
 0x523   :  { %v1532_v53 = vpop.f32.mrb[50].mxu0 }
 0x524   :  { %v3215_v54 = vpop.f32.mrb[51].mxu0  ;;  %v2111_v17 = vpack.c.bf16 %v2107_v11, %v2107_v11 }
 0x525   :  { %v1581_v55 = vpop.f32.mrb[48].mxu1 }
 0x526   :  { %v3222_v56 = vpop.f32.mrb[49].mxu1  ;;  %v2108_v18 = vmul.f32 0.088388346, %v1581_v55 }
 0x527   :  { %v1584_v57 = vpop.f32.mrb[50].mxu1 }
 0x528   :  { %v3223_v58 = vpop.f32.mrb[51].mxu1  ;;  %v2112_v19 = vpack.c.bf16 %v2108_v18, %v2108_v18 }
 0x531   :  { %v1633_v59 = vpop.f32.mrb[52].mxu0 }
 0x532   :  { %v3230_v60 = vpop.f32.mrb[53].mxu0  ;;  %v2109_v29 = vmul.f32 0.088388346, %v1633_v59 }
 0x533   :  { %v1636_v61 = vpop.f32.mrb[54].mxu0 }
 0x534   :  { %v3231_v62 = vpop.f32.mrb[55].mxu0  ;;  %v2113_v33 = vpack.c.bf16 %v2109_v29, %v2109_v29 }
 0x535   :  { %v1685_v63 = vpop.f32.mrb[52].mxu1 }
 0x536   :  { %v3238_v1 = vpop.f32.mrb[53].mxu1  ;;  %v2110_v34 = vmul.f32 0.088388346, %v1685_v63 }
 0x537   :  { %v1688_v2 = vpop.f32.mrb[54].mxu1 }
 0x538   :  { %v3239_v3 = vpop.f32.mrb[55].mxu1  ;;  %v2114_v36 = vpack.c.bf16 %v2110_v34, %v2110_v34 }
 0x541   :  { %v1737_v4 = vpop.f32.mrb[56].mxu0 }
 0x542   :  { %v2115_v5 = vpack.c.bf16 %v1737_v4, %v1737_v4  ;;  %v3246_v6 = vpop.f32.mrb[57].mxu0 }
 0x543   :  { %v1740_v7 = vpop.f32.mrb[58].mxu0 }
 0x544   :  { %v2127_v8 = vsel %vm755_vm1, %v2115_v5, 0  ;;  %v3247_v9 = vpop.f32.mrb[59].mxu0 }
 0x545   :  { %v1789_v10 = vpop.f32.mrb[56].mxu1  ;;  %3305 = vmatpush3.bf16.xpose.msra.mxu0 %v2127_v8 }
 0x546   :  { %v2116_v12 = vpack.c.bf16 %v1789_v10, %v1789_v10  ;;  %v3254_v13 = vpop.f32.mrb[57].mxu1  ;;  %3316 = vmatprep.subr.bf16.mxu0 %v3591_v0 }
 0x547   :  { %v1792_v14 = vpop.f32.mrb[58].mxu1 }
 0x548   :  { %v2173_v15 = vsel %vm755_vm1, %v2116_v12, 0  ;;  %v3255_v16 = vpop.f32.mrb[59].mxu1 }
 0x549   :  { %3311 = vmatpush3.bf16.xpose.msra.mxu1 %v2173_v15 }
 0x54a   :  { %3322 = vmatprep.subr.bf16.mxu1 %v3591_v0 }
 0x54c   :  { %3307 = vmatmul.mubr.msk.bf16.vlgmr.msra.gmra.mrb[72].mxu0 %vm755_vm1, %v2111_v17 }
 0x54d   :  { %3318 = vmatprep.mubr.msk.bf16.mxu0 %vm3592_vm0, %v3591_v0 }
 0x550   :  { %3313 = vmatmul.mubr.msk.bf16.vlgmr.msra.gmra.mrb[72].mxu1 %vm755_vm1, %v2112_v19 }
 0x551   :  { %v1841_v20 = vpop.f32.mrb[60].mxu0  ;;  %3324 = vmatprep.mubr.msk.bf16.mxu1 %vm3592_vm0, %v3591_v0 }
 0x552   :  { %v2117_v21 = vpack.c.bf16 %v1841_v20, %v1841_v20  ;;  %v3262_v22 = vpop.f32.mrb[61].mxu0 }
 0x553   :  { %v1844_v23 = vpop.f32.mrb[62].mxu0 }
 0x554   :  { %v2219_v26 = vsel %vm755_vm1, %v2117_v21, 0  ;;  %v3263_v27 = vpop.f32.mrb[63].mxu0 }
 0x555   :  { %v1893_v28 = vpop.f32.mrb[60].mxu1  ;;  %3317 = vmatpush3.bf16.xpose.msra.mxu0 %v2219_v26 }
 0x556   :  { %v2118_v30 = vpack.c.bf16 %v1893_v28, %v1893_v28  ;;  %v3270_v24 = vpop.f32.mrb[61].mxu1  ;;  %3328 = vmatprep.subr.bf16.mxu0 %v3591_v0 }
 0x557   :  { %v1896_v31 = vpop.f32.mrb[62].mxu1 }
 0x558   :  { %v2265_v25 = vsel %vm755_vm1, %v2118_v30, 0  ;;  %v3271_v32 = vpop.f32.mrb[63].mxu1 }
 0x559   :  { %3323 = vmatpush3.bf16.xpose.msra.mxu1 %v2265_v25 }
 0x55a   :  { %3334 = vmatprep.subr.bf16.mxu1 %v3591_v0 }
 0x55c   :  { %3319 = vmatmul.mubr.msk.bf16.vlgmr.msra.gmra.mrb[76].mxu0 %vm755_vm1, %v2113_v33 }
 0x55d   :  { %3330 = vmatprep.mubr.msk.bf16.mxu0 %vm3592_vm0, %v3591_v0 }
 0x560   :  { %3325 = vmatmul.mubr.msk.bf16.vlgmr.msra.gmra.mrb[76].mxu1 %vm755_vm1, %v2114_v36 }
 0x561   :  { %3336 = vmatprep.mubr.msk.bf16.mxu1 %vm3592_vm0, %v3591_v0  ;;  %v1945_v37 = vpop.f32.mrb[64].mxu0 }
 0x562   :  { %v2119_v38 = vpack.c.bf16 %v1945_v37, %v1945_v37  ;;  %v3278_v39 = vpop.f32.mrb[65].mxu0 }
 0x563   :  { %v1948_v40 = vpop.f32.mrb[66].mxu0 }
 0x564   :  { %v2363_v41 = vsel %vm998_vm2, %v2119_v38, 0  ;;  %v3279_v42 = vpop.f32.mrb[67].mxu0 }
 0x565   :  { %v1997_v43 = vpop.f32.mrb[64].mxu1  ;;  %3329 = vmatpush3.bf16.msra.mxu0 %v2363_v41 }
 0x566   :  { %v2120_v44 = vpack.c.bf16 %v1997_v43, %v1997_v43  ;;  %v3286_v46 = vpop.f32.mrb[65].mxu1  ;;  %3340 = vmatprep.subr.bf16.mxu0 %v3591_v0 }
 0x567   :  { %v2000_v47 = vpop.f32.mrb[66].mxu1 }
 0x568   :  { %v2409_v48 = vsel %vm998_vm2, %v2120_v44, 0  ;;  %v3287_v49 = vpop.f32.mrb[67].mxu1 }
 0x569   :  { %3335 = vmatpush3.bf16.msra.mxu1 %v2409_v48 }
 0x56a   :  { %3346 = vmatprep.subr.bf16.mxu1 %v3591_v0 }
 0x571   :  { %v3912_v50 = vpop.f32.mrb[68].mxu0 }
 0x572   :  { %v3294_v51 = vpop.f32.mrb[69].mxu0  ;;  %v2121_v42 = vpack.c.bf16 %v3912_v50, %v3912_v50 }
 0x573   :  { %v2052_v52 = vpop.f32.mrb[70].mxu0 }
 0x574   :  { %v3295_v53 = vpop.f32.mrb[71].mxu0  ;;  %v2455_v47 = vsel %vm998_vm2, %v2121_v42, 0 }
 0x575   :  { %v3914_v54 = vpop.f32.mrb[68].mxu1 }
 0x576   :  { %v3302_v55 = vpop.f32.mrb[69].mxu1  ;;  %v2122_v48 = vpack.c.bf16 %v3914_v54, %v3914_v54 }
 0x577   :  { %v2104_v56 = vpop.f32.mrb[70].mxu1 }
 0x578   :  { %v3303_v57 = vpop.f32.mrb[71].mxu1  ;;  %v2501_v50 = vsel %vm998_vm2, %v2122_v48, 0  ;;  %v3450_v56 = vld [vmem:[#allocation7] sm:$0xff]  }
 0x61f   :  { %v2163_v58 = vpop.f32.mrb[72].mxu0 }
 0x620   :  { %v2307_v59 = vsel %vm3760_vm3, %v2163_v58, -1e+30  ;;  %v3308_v60 = vpop.f32.mrb[73].mxu0 }
 0x621   :  { %v2166_v61 = vpop.f32.mrb[74].mxu0  ;;  %v2311_v62 = vsel %vm946_vm4, %v2307_v59, -inf }
 0x622   :  { %2312 = vmax.xlane.f32.xlu0 %v2311_v62  ;;  %v3309_v63 = vpop.f32.mrb[75].mxu0  ;;  %v3451_v61 = vld [vmem:[#allocation7 + $0x8] sm:$0xff]   ;;  %v3452_v62 = vld [vmem:[#allocation7 + $0x10] sm:$0xff]  }
 0x623   :  { %v2209_v1 = vpop.f32.mrb[72].mxu1  ;;  %v3453_v63 = vld [vmem:[#allocation7 + $0x18] sm:$0xff]  }
 0x624   :  { %v2308_v2 = vsel %vm3760_vm3, %v2209_v1, -1e+30  ;;  %v3314_v3 = vpop.f32.mrb[73].mxu1 }
 0x625   :  { %v2212_v4 = vpop.f32.mrb[74].mxu1  ;;  %v2314_v5 = vsel %vm946_vm4, %v2308_v2, -inf }
 0x626   :  { %2315 = vmax.xlane.f32.xlu1 %v2314_v5  ;;  %v3315_v6 = vpop.f32.mrb[75].mxu1 }
 0x62f   :  { %v2255_v7 = vpop.f32.mrb[76].mxu0 }
 0x630   :  { %v2309_v8 = vsel %vm3760_vm3, %v2255_v7, -1e+30  ;;  %v3320_v9 = vpop.f32.mrb[77].mxu0 }
 0x631   :  { %v2258_v10 = vpop.f32.mrb[78].mxu0  ;;  %v2317_v11 = vsel %vm946_vm4, %v2309_v8, -inf  ;;  %v3456_v9 = vld [vmem:[#allocation7 + $0x30] sm:$0xff]  }
 0x632   :  { %2318 = vmax.xlane.f32.xlu0 %v2317_v11  ;;  %v3321_v12 = vpop.f32.mrb[79].mxu0 }
 0x633   :  { %v2301_v13 = vpop.f32.mrb[76].mxu1 }
 0x634   :  { %v2310_v14 = vsel %vm3760_vm3, %v2301_v13, -1e+30  ;;  %v3326_v15 = vpop.f32.mrb[77].mxu1 }
 0x635   :  { %v2304_v16 = vpop.f32.mrb[78].mxu1  ;;  %v2320_v17 = vsel %vm946_vm4, %v2310_v14, -inf }
 0x636   :  { %2321 = vmax.xlane.f32.xlu1 %v2320_v17  ;;  %v3327_v18 = vpop.f32.mrb[79].mxu1 }
 0x6af   :  { %v2313_v19 = vpop.xlane.xlu0 %2312 }
 0x6b0   :  { %v2323_v20 = vsub.f32 %v2307_v59, %v2313_v19 }
 0x6b2   :  { %v2327_v21 = vmul.f32 1.442695, %v2323_v20 }
 0x6b3   :  { %v2316_v22 = vpop.xlane.xlu1 %2315 }
 0x6b4   :  { %3474 = vpow2.f32 %v2327_v21  ;;  %v2324_v23 = vsub.f32 %v2308_v2, %v2316_v22  ;;  %v3454_v2 = vld [vmem:[#allocation7 + $0x20] sm:$0xff]  }
 0x6b6   :  { %v2329_v26 = vmul.f32 1.442695, %v2324_v23 }
 0x6b8   :  { %3476 = vpow2.f32 %v2329_v26 }
 0x6be   :  { %v3475_v27 = vpop.eup %3474 }
 0x6bf   :  { %v2319_v28 = vpop.xlane.xlu0 %2318  ;;  %v2335_v29 = vsel %vm946_vm4, %v3475_v27, 0.0 }
 0x6c0   :  { %v2325_v35 = vsub.f32 %v2309_v8, %v2319_v28  ;;  %2336 = vadd.xlane.f32.xlu0 %v2335_v29  ;;  %v3455_v8 = vld [vmem:[#allocation7 + $0x28] sm:$0xff]  }
 0x6c2   :  { %v3477_v30 = vpop.eup %3476  ;;  %v2331_v24 = vmul.f32 1.442695, %v2325_v35 }
 0x6c3   :  { %v2322_v31 = vpop.xlane.xlu1 %2321  ;;  %v2338_v25 = vsel %vm946_vm4, %v3477_v30, 0.0 }
 0x6c4   :  { %3478 = vpow2.f32 %v2331_v24  ;;  %v2326_v32 = vsub.f32 %v2310_v14, %v2322_v31  ;;  %2339 = vadd.xlane.f32.xlu1 %v2338_v25  ;;  %v3457_v14 = vld [vmem:[#allocation7 + $0x38] sm:$0xff]  }
 0x6c6   :  { %v2333_v33 = vmul.f32 1.442695, %v2326_v32 }
 0x6c8   :  { %3480 = vpow2.f32 %v2333_v33 }
 0x6ce   :  { %v3479_v34 = vpop.eup %3478 }
 0x6cf   :  { %v2341_v36 = vsel %vm946_vm4, %v3479_v34, 0.0 }
 0x6d0   :  { %2342 = vadd.xlane.f32.xlu0 %v2341_v36 }
 0x6d2   :  { %v3481_v37 = vpop.eup %3480 }
 0x6d3   :  { %v2344_v38 = vsel %vm946_vm4, %v3481_v37, 0.0 }
 0x6d4   :  { %2345 = vadd.xlane.f32.xlu1 %v2344_v38 }
 0x74d   :  { %v2337_v39 = vpop.xlane.xlu0 %2336 }
 0x74e   :  { %3482 = vrcp.f32 %v2337_v39 }
 0x751   :  { %v2340_v40 = vpop.xlane.xlu1 %2339 }
 0x752   :  { %3484 = vrcp.f32 %v2340_v40 }
 0x758   :  { %v3483_v41 = vpop.eup %3482 }
 0x759   :  { %v2351_v43 = vmul.f32 %v3483_v41, %v3475_v27 }
 0x75b   :  { %v2355_v44 = vpack.c.bf16 %v2351_v43, %v2351_v43 }
 0x75c   :  { %v3485_v46 = vpop.eup %3484 }
 0x75d   :  { %v2352_v49 = vmul.f32 %v3485_v46, %v3477_v30  ;;  %3331 = vmatmul.mubr.msk.bf16.vlgmr.msra.gmra.mrb[80].mxu0 %vm946_vm4, %v2355_v44  ;;  %v2343_v51 = vpop.xlane.xlu0 %2342 }
 0x75e   :  { %3341 = vmatpush3.bf16.msra.mxu0 %v2455_v47  ;;  %3486 = vrcp.f32 %v2343_v51  ;;  %3342 = vmatprep.mubr.msk.bf16.mxu0 %vm3592_vm0, %v3591_v0 }
 0x75f   :  { %v2356_v52 = vpack.c.bf16 %v2352_v49, %v2352_v49  ;;  %3352 = vmatprep.subr.bf16.mxu0 %v3591_v0 }
 0x761   :  { %3337 = vmatmul.mubr.msk.bf16.vlgmr.msra.gmra.mrb[80].mxu1 %vm946_vm4, %v2356_v52  ;;  %v2346_v53 = vpop.xlane.xlu1 %2345 }
 0x762   :  { %3347 = vmatpush3.bf16.msra.mxu1 %v2501_v50  ;;  %3488 = vrcp.f32 %v2346_v53  ;;  %3348 = vmatprep.mubr.msk.bf16.mxu1 %vm3592_vm0, %v3591_v0 }
 0x763   :  { %3360 = vmatprep.subr.bf16.mxu1 %v3591_v0 }
 0x768   :  { %v3487_v54 = vpop.eup %3486 }
 0x769   :  { %v2353_v55 = vmul.f32 %v3487_v54, %v3479_v34 }
 0x76b   :  { %v2357_v57 = vpack.c.bf16 %v2353_v55, %v2353_v55 }
 0x76c   :  { %v3489_v58 = vpop.eup %3488 }
 0x76d   :  { %v2354_v59 = vmul.f32 %v3489_v58, %v3481_v37  ;;  %3343 = vmatmul.mubr.msk.bf16.vlgmr.msra.gmra.mrb[84].mxu0 %vm946_vm4, %v2357_v57 }
 0x76e   :  { %3353 = vmatpush3.bf16.msra.mxu0 %v3450_v56  ;;  %3356 = vmatprep.mubr.msk.bf16.mxu0 %vm3592_vm0, %v3591_v0 }
 0x76f   :  { %v2358_v60 = vpack.c.bf16 %v2354_v59, %v2354_v59  ;;  %3354 = vmatprep.subr.bf16.mxu0 %v3591_v0 }
 0x771   :  { %3349 = vmatmul.mubr.msk.bf16.vlgmr.msra.gmra.mrb[84].mxu1 %vm946_vm4, %v2358_v60 }
 0x772   :  { %3364 = vmatprep.mubr.msk.bf16.mxu1 %vm3592_vm0, %v3591_v0  ;;  %3355 = vmatpush3.bf16.msra.mxu0 %v3451_v61 }
 0x773   :  { %3361 = vmatpush3.bf16.msra.mxu1 %v3452_v62  ;;  %3368 = vmatprep.subr.bf16.mxu0 %v3591_v0 }
 0x774   :  { %3362 = vmatprep.subr.bf16.mxu1 %v3591_v0 }
 0x777   :  { %3363 = vmatpush3.bf16.msra.mxu1 %v3453_v63 }
 0x778   :  { %3376 = vmatprep.subr.bf16.mxu1 %v3591_v0 }
 0x830   :  { %v2399_v1 = vpop.f32.mrb[80].mxu0 }
 0x831   :  { %v2543_v3 = vpack.c.bf16 %v2399_v1, %v2399_v1  ;;  %v3332_v4 = vpop.f32.mrb[81].mxu0 }
 0x832   :  { %v2402_v5 = vpop.f32.mrb[82].mxu0 }
 0x833   :  { %v3333_v6 = vpop.f32.mrb[83].mxu0  ;;  %3357 = vmatmul.mubr.msk.bf16.vlgmr.msra.gmra.mrb[88].mxu0 %vm755_vm1, %v2543_v3 }
 0x834   :  { %v2445_v7 = vpop.f32.mrb[80].mxu1  ;;  %3369 = vmatpush3.bf16.msra.mxu0 %v3454_v2  ;;  %3372 = vmatprep.mubr.msk.bf16.mxu0 %vm3592_vm0, %v3591_v0 }
 0x835   :  { %v2544_v10 = vpack.c.bf16 %v2445_v7, %v2445_v7  ;;  %v3338_v11 = vpop.f32.mrb[81].mxu1  ;;  %3370 = vmatprep.subr.bf16.mxu0 %v3591_v0 }
 0x836   :  { %v2448_v12 = vpop.f32.mrb[82].mxu1 }
 0x837   :  { %v3339_v13 = vpop.f32.mrb[83].mxu1  ;;  %3365 = vmatmul.mubr.msk.bf16.vlgmr.msra.gmra.mrb[88].mxu1 %vm755_vm1, %v2544_v10 }
 0x838   :  { %3371 = vmatpush3.bf16.msra.mxu0 %v3455_v8  ;;  %3377 = vmatpush3.bf16.msra.mxu1 %v3456_v9 }
 0x839   :  { %3378 = vmatprep.subr.bf16.mxu1 %v3591_v0  ;;  %3380 = vmatprep.mubr.msk.bf16.mxu1 %vm3592_vm0, %v3591_v0 }
 0x83c   :  { %3379 = vmatpush3.bf16.msra.mxu1 %v3457_v14 }
 0x840   :  { %v2491_v15 = vpop.f32.mrb[84].mxu0 }
 0x841   :  { %v2545_v16 = vpack.c.bf16 %v2491_v15, %v2491_v15  ;;  %v3344_v17 = vpop.f32.mrb[85].mxu0 }
 0x842   :  { %v2494_v18 = vpop.f32.mrb[86].mxu0 }
 0x843   :  { %v3345_v19 = vpop.f32.mrb[87].mxu0  ;;  %3373 = vmatmul.mubr.msk.bf16.vlgmr.msra.gmra.mrb[92].mxu0 %vm755_vm1, %v2545_v16 }
 0x844   :  { %v2537_v20 = vpop.f32.mrb[84].mxu1 }
 0x845   :  { %v2546_v21 = vpack.c.bf16 %v2537_v20, %v2537_v20  ;;  %v3350_v22 = vpop.f32.mrb[85].mxu1 }
 0x846   :  { %v2540_v23 = vpop.f32.mrb[86].mxu1 }
 0x847   :  { %v3351_v26 = vpop.f32.mrb[87].mxu1  ;;  %3381 = vmatmul.mubr.msk.bf16.vlgmr.msra.gmra.mrb[92].mxu1 %vm755_vm1, %v2546_v21 }
 0x906   :  { %v2612_v27 = vpop.f32.mrb[88].mxu0 }
 0x907   :  { %v3358_v28 = vpop.f32.mrb[89].mxu0 }
 0x908   :  { %v2615_v29 = vpop.f32.mrb[90].mxu0 }
 0x909   :  { %v3359_v35 = vpop.f32.mrb[91].mxu0 }
 0x90a   :  { %v2667_v0 = vpop.f32.mrb[88].mxu1 }
 0x90b   :  { %v2783_v30 = vadd.f32 %v2667_v0, %v2612_v27  ;;  %v3366_v24 = vpop.f32.mrb[89].mxu1 }
 0x90c   :  { %v2670_v31 = vpop.f32.mrb[90].mxu1 }
 0x90d   :  { %v3367_v25 = vpop.f32.mrb[91].mxu1 }
 0x916   :  { %v2722_v32 = vpop.f32.mrb[92].mxu0 }
 0x917   :  { %v2784_v33 = vadd.f32 %v2783_v30, %v2722_v32  ;;  %v3374_v34 = vpop.f32.mrb[93].mxu0 }
 0x918   :  { %v2725_v36 = vpop.f32.mrb[94].mxu0 }
 0x919   :  { %v3375_v37 = vpop.f32.mrb[95].mxu0 }
 0x91a   :  { %v2777_v38 = vpop.f32.mrb[92].mxu1 }
 0x91b   :  { %v2785_v39 = vadd.f32 %v2784_v33, %v2777_v38  ;;  %v3382_v40 = vpop.f32.mrb[93].mxu1 }
 0x91c   :  { %v2780_v41 = vpop.f32.mrb[94].mxu1 }
 0x91d   :  { %v2793_v42 = vadd.f32 %v3885_v45, %v2785_v39  ;;  %v3383_v43 = vpop.f32.mrb[95].mxu1 }
 0x91f   :  { %2795 = vst [vmem:[#allocation8 + $0x8] sm:$0xff] %v2793_v42 }
 0x920   :  { %3567 = shalt.err (!%p3564_p0)
}
 0x921   :  { %s3568_s6 = scalar_lea.hbm %s3986_s4, 256 }
 0x922   :  { %p3569_p1 = scmp.ne.s32.totalorder %s3986_s4, %s3568_s6  ;;  %p3572_p2 = scmp.lt.u32.totalorder %s3568_s6, %s3986_s4 }
 0x924   :  { %p3574_p3 = pnand %p3572_p2, %p3569_p1 }
 0x926   :  { %3577 = shalt.err (!%p3574_p3)
}
 0x927   :  { %2807 = dma.vmem_to_hbm [thread:$0]  %s2802_s26, 256, %s3986_s4, [#allocation4], %s3588_s1, %s3588_s1, %s3589_s13  }
 0x928   :  { %3582 = dma.done.wait [#allocation4], 256  }
 0x929   :  { %3583 = vsyncadd [#allocation4], 4294967040 }
 0x92a   :  { %2811 = vsyncpa [#allocation3], 1 }
 0x92b   :  { %2812 = vsyncpa [#allocation6], 1 }
 0x92c   :  { %2813 = vsyncpa [#allocation4], 1 }

</bundles_post_ra>
